<compile_context>
chip_gen: v7x
topology: tpu7x:2x2x1
jax: 0.10.0
libtpu: 0.0.40
codegen_flags: <defaults>
</compile_context>

<pallas_src>
import math

import jax
import jax.numpy as jnp
from jax.experimental import pallas as pl
from jax.experimental.pallas import tpu as pltpu


_VMEM_SPEC = pl.BlockSpec(memory_space=pltpu.MemorySpace.VMEM)


# ------------------------------ fused kernel ---------------------------------

def _make_seq2seq_kernel(num_layers):
    """Build the fused encoder+decoder kernel for a fixed layer count."""

    def kernel(*refs):
        # refs = (x(B,T,IN), loc(B,DEC_IN),
        #         enc0_wx(IN,4H), enc0_wh(H,4H), enc0_b(1,4H),
        #         [enc_wcat_l(2H,4H),     enc_b_l(1,4H)]  for l = 1..L-1,
        #         [dec_wcat_l(Din+H,4H),  dec_b_l(1,4H)]  for l = 0..L-1,
        #         lin_w(H,OUT), lin_b(1,OUT),
        #         out(B,T_dec,OUT))
        x_ref, loc_ref = refs[0], refs[1]
        out_ref = refs[-1]
        lin_w_ref, lin_b_ref = refs[-3], refs[-2]
        w_refs = refs[2:-3]

        B = loc_ref.shape[0]
        t_enc = x_ref.shape[1]
        timesteps = out_ref.shape[1]
        out_dim = out_ref.shape[2]
        H = w_refs[1].shape[0]                       # enc0_wh: (H, 4H)

        enc0_wx_ref, enc0_wh_ref = w_refs[0], w_refs[1]
        enc_wcat_refs = [w_refs[3 + 2 * l] for l in range(num_layers - 1)]
        off = 3 + 2 * (num_layers - 1)
        dec_wcat_refs = [w_refs[off + 2 * l] for l in range(num_layers)]

        # Bias broadcasts hoisted once (broadcast_in_dim is not CSE'd by JAX).
        enc0_b = jnp.broadcast_to(w_refs[2][...], (B, 4 * H))
        enc_b = [jnp.broadcast_to(w_refs[4 + 2 * l][...], (B, 4 * H))
                 for l in range(num_layers - 1)]
        dec_b = [jnp.broadcast_to(w_refs[off + 2 * l + 1][...], (B, 4 * H))
                 for l in range(num_layers)]
        lin_b = jnp.broadcast_to(lin_b_ref[...], (B, out_dim))

        def gates(g, h):
            # g = [ r | z | gi_n | gh_n ] pre-activations, 4H = 128 lanes.
            rz = jax.nn.sigmoid(g[:, :2 * H])        # fused r/z: one EUP pass
            r, z = rz[:, :H], rz[:, H:2 * H]
            n = jnp.tanh(g[:, 2 * H:3 * H] + r * g[:, 3 * H:4 * H])
            return n + z * (h - n)                   # == (1 - z) * n + z * h

        def cell(x, h, wcat_ref, b):
            # Single K-concatenated MXU dot per GRU cell.
            xh = jnp.concatenate([x, h], axis=-1)
            g = jnp.dot(xh, wcat_ref[...],
                        preferred_element_type=jnp.float32) + b
            return gates(g, h)

        # ------------------------------ encoder -----------------------------
        # Layer-0 x-side matmuls do not depend on the hidden state: issue them
        # all up front (bias folded in), off the serial recurrence chain.
        gx0 = [jnp.dot(x_ref[:, t, :], enc0_wx_ref[...],
                       preferred_element_type=jnp.float32) + enc0_b
               for t in range(t_enc)]

        # NOTE: time/layer loops are fully unrolled (tiny static trip counts).
        # If T_enc/TIME_STEPS or H are ever scaled up, switch to lax.fori_loop
        # with a carried state and a lane-dense output slab.
        h = [jnp.zeros((B, H), jnp.float32) for _ in range(num_layers)]
        for t in range(t_enc):
            g0 = gx0[t] + jnp.dot(h[0], enc0_wh_ref[...],
                                  preferred_element_type=jnp.float32)
            h[0] = gates(g0, h[0])
            x = h[0]
            for l in range(1, num_layers):
                h[l] = cell(x, h[l], enc_wcat_refs[l - 1], enc_b[l - 1])
                x = h[l]

        # ------------------------------ decoder -----------------------------
        lin_w = lin_w_ref[...]                       # (H, OUT)
        loc = loc_ref[...]
        for t in range(timesteps):
            x = loc
            for l in range(num_layers):
                h[l] = cell(x, h[l], dec_wcat_refs[l], dec_b[l])
                x = h[l]
            # TODO(synk): decoder dropout (p=0.5) is identity in eval mode;
            # stochastic training-mode dropout intentionally omitted.
            loc = (jnp.dot(h[-1], lin_w, preferred_element_type=jnp.float32)
                   + lin_b + loc)
            out_ref[:, t, :] = loc.astype(out_ref.dtype)

    return kernel


# --------------------------- host-side weight packing -------------------------

def _pack_gru(wih, whh, bih, bhh):
    """PyTorch GRU weights (gate order r, z, n) -> 4H-wide packed layout.

    wih: (3H, D_in), whh: (3H, H), bih/bhh: (3H,).
    Returns wx (D_in, 4H), wh (H, 4H), b (1, 4H) with gate slab
    [ r | z | gi_n | gh_n ]; r/z biases pre-combined, gh_n bias kept separate
    so the kernel can apply n = tanh(gi_n + r * gh_n)  (PyTorch semantics).
    """
    H = whh.shape[-1]
    d_in = wih.shape[-1]
    wx = jnp.zeros((d_in, 4 * H), jnp.float32)
    wx = wx.at[:, 0 * H:1 * H].set(wih[0 * H:1 * H].T)     # r   (x side)
    wx = wx.at[:, 1 * H:2 * H].set(wih[1 * H:2 * H].T)     # z   (x side)
    wx = wx.at[:, 2 * H:3 * H].set(wih[2 * H:3 * H].T)     # gi_n
    wh = jnp.zeros((H, 4 * H), jnp.float32)
    wh = wh.at[:, 0 * H:1 * H].set(whh[0 * H:1 * H].T)     # r   (h side)
    wh = wh.at[:, 1 * H:2 * H].set(whh[1 * H:2 * H].T)     # z   (h side)
    wh = wh.at[:, 3 * H:4 * H].set(whh[2 * H:3 * H].T)     # gh_n
    b = jnp.concatenate([bih[0 * H:1 * H] + bhh[0 * H:1 * H],
                         bih[1 * H:2 * H] + bhh[1 * H:2 * H],
                         bih[2 * H:3 * H],
                         bhh[2 * H:3 * H]])[None, :]
    return wx, wh, b


def pack_params(params, num_layers):
    """One-time packing into the fused-kernel layout (kept off the hot path)."""
    packed = {}
    wx0, wh0, b0 = _pack_gru(*params["enc"][0])
    packed["enc0_wx"], packed["enc0_wh"], packed["enc0_b"] = wx0, wh0, b0
    packed["enc_wcat"], packed["enc_b"] = [], []
    for l in range(1, num_layers):
        wx, wh, b = _pack_gru(*params["enc"][l])
        packed["enc_wcat"].append(jnp.concatenate([wx, wh], axis=0))  # (2H,4H)
        packed["enc_b"].append(b)
    packed["dec_wcat"], packed["dec_b"] = [], []
    for l in range(num_layers):
        wx, wh, b = _pack_gru(*params["dec"][l])
        packed["dec_wcat"].append(jnp.concatenate([wx, wh], axis=0))  # (Din+H,4H)
        packed["dec_b"].append(b)
    packed["lin_w"] = params["lin_w"].T              # (H, OUT)
    packed["lin_b"] = params["lin_b"][None, :]       # (1, OUT)
    return packed


# --------------------------------- wrapper ------------------------------------

def seq2seq_forward(packed, in_data, last_location, num_layers, timesteps):
    """Forward pass matching Seq2Seq.forward (eval mode): exactly one pallas_call."""
    B = in_data.shape[0]
    out_dim = packed["lin_w"].shape[1]
    # Residual head requires OUTPUT_SIZE == DECODER_INPUT_SIZE.
    assert last_location.shape[-1] == out_dim

    inputs = [in_data, last_location,
              packed["enc0_wx"], packed["enc0_wh"], packed["enc0_b"]]
    for l in range(num_layers - 1):
        inputs += [packed["enc_wcat"][l], packed["enc_b"][l]]
    for l in range(num_layers):
        inputs += [packed["dec_wcat"][l], packed["dec_b"][l]]
    inputs += [packed["lin_w"], packed["lin_b"]]

    return pl.pallas_call(
        _make_seq2seq_kernel(num_layers),
        out_shape=jax.ShapeDtypeStruct((B, timesteps, out_dim), jnp.float32),
        in_specs=[_VMEM_SPEC] * len(inputs),
        out_specs=_VMEM_SPEC,
    )(*inputs)


# ------------------------------ parameter init --------------------------------

def init_params(key, input_size, hidden_size, decoder_input_size, output_size,
                num_layers):
    """Deterministic PyTorch-style uniform(-1/sqrt(H), 1/sqrt(H)) init.

    Stored in raw PyTorch layout; packing for the kernel is done by pack_params.
    """
    params = {"enc": [], "dec": []}
    k = 1.0 / math.sqrt(hidden_size)

    def u(key, shape, bound):
        return jax.random.uniform(key, shape, jnp.float32, -bound, bound)

    keys = jax.random.split(key, 8 * num_layers + 2)
    ki = 0
    for l in range(num_layers):
        d_in = input_size if l == 0 else hidden_size
        wih = u(keys[ki], (3 * hidden_size, d_in), k); ki += 1
        whh = u(keys[ki], (3 * hidden_size, hidden_size), k); ki += 1
        bih = u(keys[ki], (3 * hidden_size,), k); ki += 1
        bhh = u(keys[ki], (3 * hidden_size,), k); ki += 1
        params["enc"].append((wih, whh, bih, bhh))
    for l in range(num_layers):
        d_in = decoder_input_size if l == 0 else hidden_size
        wih = u(keys[ki], (3 * hidden_size, d_in), k); ki += 1
        whh = u(keys[ki], (3 * hidden_size, hidden_size), k); ki += 1
        bih = u(keys[ki], (3 * hidden_size,), k); ki += 1
        bhh = u(keys[ki], (3 * hidden_size,), k); ki += 1
        params["dec"].append((wih, whh, bih, bhh))
    params["lin_w"] = u(keys[ki], (output_size, hidden_size), k); ki += 1
    params["lin_b"] = u(keys[ki], (output_size,), k)
    return params


# ----------------------------- pure-JAX reference ------------------------------

def _gru_cell_ref(x, h, wih, whh, bih, bhh):
    H = h.shape[-1]
    hp = jax.lax.Precision.HIGHEST
    gi = jnp.dot(x, wih.T, precision=hp) + bih
    gh = jnp.dot(h, whh.T, precision=hp) + bhh
    r = jax.nn.sigmoid(gi[:, :H] + gh[:, :H])
    z = jax.nn.sigmoid(gi[:, H:2 * H] + gh[:, H:2 * H])
    n = jnp.tanh(gi[:, 2 * H:] + r * gh[:, 2 * H:])
    return (1.0 - z) * n + z * h


def seq2seq_ref(params, in_data, last_location, hidden_size, num_layers,
                timesteps):
    hp = jax.lax.Precision.HIGHEST
    B = in_data.shape[0]
    h = [jnp.zeros((B, hidden_size), jnp.float32) for _ in range(num_layers)]
    for t in range(in_data.shape[1]):
        layer_in = in_data[:, t, :]
        for l in range(num_layers):
            h[l] = _gru_cell_ref(layer_in, h[l], *params["enc"][l])
            layer_in = h[l]
    hidden = h
    outputs = []
    loc = last_location
    for _ in range(timesteps):
        xx = loc
        new_hidden = []
        for l in range(num_layers):
            xx = _gru_cell_ref(xx, hidden[l], *params["dec"][l])
            new_hidden.append(xx)
        loc = (jnp.dot(new_hidden[-1], params["lin_w"].T, precision=hp)
               + params["lin_b"] + loc)
        outputs.append(loc[:, None, :])
        hidden = new_hidden
    return jnp.concatenate(outputs, axis=1)


# ----------------------------------- main --------------------------------------

if __name__ == "__main__":
    INPUT_SIZE = 4
    HIDDEN_SIZE = 32
    DECODER_INPUT_SIZE = 3
    OUTPUT_SIZE = 3          # residual add requires OUTPUT_SIZE == DECODER_INPUT_SIZE
    NUM_LAYERS = 2
    TIME_STEPS = 4
    BATCH = 2
    T_ENC = 8

    key = jax.random.PRNGKey(0)
    kp, kx, kl = jax.random.split(key, 3)

    params = init_params(kp, INPUT_SIZE, HIDDEN_SIZE, DECODER_INPUT_SIZE,
                         OUTPUT_SIZE, NUM_LAYERS)
    packed = pack_params(params, NUM_LAYERS)       # one-time, off the hot path

    in_data = jax.random.normal(kx, (BATCH, T_ENC, INPUT_SIZE), jnp.float32)
    last_location = jax.random.normal(kl, (BATCH, DECODER_INPUT_SIZE), jnp.float32)

    fwd = jax.jit(seq2seq_forward, static_argnums=(3, 4))
    out = fwd(packed, in_data, last_location, NUM_LAYERS, TIME_STEPS)
    out = jax.block_until_ready(out)

    ref = seq2seq_ref(params, in_data, last_location,
                      HIDDEN_SIZE, NUM_LAYERS, TIME_STEPS)
    assert out.shape == (BATCH, TIME_STEPS, OUTPUT_SIZE)
    assert jnp.allclose(out, ref, atol=1e-3, rtol=1e-3), "mismatch vs reference"

    print("KERNEL_OK")
</pallas_src>

<mosaic_0001>
module attributes {stable_mosaic.version = 11 : i64} {
  func.func @kernel(%arg0: memref<2x8x4xf32, #tpu.memory_space<vmem>>, %arg1: memref<2x3xf32, #tpu.memory_space<vmem>>, %arg2: memref<4x128xf32, #tpu.memory_space<vmem>>, %arg3: memref<32x128xf32, #tpu.memory_space<vmem>>, %arg4: memref<1x128xf32, #tpu.memory_space<vmem>>, %arg5: memref<64x128xf32, #tpu.memory_space<vmem>>, %arg6: memref<1x128xf32, #tpu.memory_space<vmem>>, %arg7: memref<35x128xf32, #tpu.memory_space<vmem>>, %arg8: memref<1x128xf32, #tpu.memory_space<vmem>>, %arg9: memref<64x128xf32, #tpu.memory_space<vmem>>, %arg10: memref<1x128xf32, #tpu.memory_space<vmem>>, %arg11: memref<32x3xf32, #tpu.memory_space<vmem>>, %arg12: memref<1x3xf32, #tpu.memory_space<vmem>>, %arg13: memref<2x4x3xf32, #tpu.memory_space<vmem>>) attributes {dimension_semantics = [], scalar_prefetch = 0 : i64, scratch_operands = 0 : i64, tpu.core_type = #tpu.core_type<tc>} {
    %c0 = arith.constant 0 : index
    %c0_0 = arith.constant 0 : index
    %0 = vector.load %arg4[%c0, %c0_0] : memref<1x128xf32, #tpu.memory_space<vmem>>, vector<1x128xf32>
    %1 = vector.shape_cast %0 : vector<1x128xf32> to vector<1x128xf32>
    %2 = vector.broadcast %1 : vector<1x128xf32> to vector<2x128xf32>
    %c0_1 = arith.constant 0 : index
    %c0_2 = arith.constant 0 : index
    %3 = vector.load %arg6[%c0_1, %c0_2] : memref<1x128xf32, #tpu.memory_space<vmem>>, vector<1x128xf32>
    %4 = vector.shape_cast %3 : vector<1x128xf32> to vector<1x128xf32>
    %5 = vector.broadcast %4 : vector<1x128xf32> to vector<2x128xf32>
    %c0_3 = arith.constant 0 : index
    %c0_4 = arith.constant 0 : index
    %6 = vector.load %arg8[%c0_3, %c0_4] : memref<1x128xf32, #tpu.memory_space<vmem>>, vector<1x128xf32>
    %7 = vector.shape_cast %6 : vector<1x128xf32> to vector<1x128xf32>
    %8 = vector.broadcast %7 : vector<1x128xf32> to vector<2x128xf32>
    %c0_5 = arith.constant 0 : index
    %c0_6 = arith.constant 0 : index
    %9 = vector.load %arg10[%c0_5, %c0_6] : memref<1x128xf32, #tpu.memory_space<vmem>>, vector<1x128xf32>
    %10 = vector.shape_cast %9 : vector<1x128xf32> to vector<1x128xf32>
    %11 = vector.broadcast %10 : vector<1x128xf32> to vector<2x128xf32>
    %c0_7 = arith.constant 0 : index
    %c0_8 = arith.constant 0 : index
    %12 = vector.load %arg12[%c0_7, %c0_8] : memref<1x3xf32, #tpu.memory_space<vmem>>, vector<1x3xf32>
    %13 = vector.shape_cast %12 : vector<1x3xf32> to vector<1x3xf32>
    %14 = vector.broadcast %13 : vector<1x3xf32> to vector<2x3xf32>
    %c0_9 = arith.constant 0 : index
    %c0_10 = arith.constant 0 : index
    %c0_11 = arith.constant 0 : index
    %15 = vector.load %arg0[%c0_9, %c0_10, %c0_11] : memref<2x8x4xf32, #tpu.memory_space<vmem>>, vector<2x1x4xf32>
    %16 = vector.shape_cast %15 : vector<2x1x4xf32> to vector<2x4xf32>
    %c0_12 = arith.constant 0 : index
    %c0_13 = arith.constant 0 : index
    %17 = vector.load %arg2[%c0_12, %c0_13] : memref<4x128xf32, #tpu.memory_space<vmem>>, vector<4x128xf32>
    %cst = arith.constant dense<0.000000e+00> : vector<2x128xf32>
    %18 = tpu.matmul %16, %17, %cst {dimension_numbers = #tpu.dot_dimension_numbers<[1], [0], [0], [1], [0, 0, 1, 1], [], []>} : vector<2x4xf32>, vector<4x128xf32>, vector<2x128xf32> -> vector<2x128xf32>
    %19 = arith.addf %18, %2 : vector<2x128xf32>
    %c0_14 = arith.constant 0 : index
    %c1 = arith.constant 1 : index
    %c0_15 = arith.constant 0 : index
    %20 = vector.load %arg0[%c0_14, %c1, %c0_15] : memref<2x8x4xf32, #tpu.memory_space<vmem>>, vector<2x1x4xf32>
    %21 = vector.shape_cast %20 : vector<2x1x4xf32> to vector<2x4xf32>
    %c0_16 = arith.constant 0 : index
    %c0_17 = arith.constant 0 : index
    %22 = vector.load %arg2[%c0_16, %c0_17] : memref<4x128xf32, #tpu.memory_space<vmem>>, vector<4x128xf32>
    %cst_18 = arith.constant dense<0.000000e+00> : vector<2x128xf32>
    %23 = tpu.matmul %21, %22, %cst_18 {dimension_numbers = #tpu.dot_dimension_numbers<[1], [0], [0], [1], [0, 0, 1, 1], [], []>} : vector<2x4xf32>, vector<4x128xf32>, vector<2x128xf32> -> vector<2x128xf32>
    %24 = arith.addf %23, %2 : vector<2x128xf32>
    %c0_19 = arith.constant 0 : index
    %c2 = arith.constant 2 : index
    %c0_20 = arith.constant 0 : index
    %25 = vector.load %arg0[%c0_19, %c2, %c0_20] : memref<2x8x4xf32, #tpu.memory_space<vmem>>, vector<2x1x4xf32>
    %26 = vector.shape_cast %25 : vector<2x1x4xf32> to vector<2x4xf32>
    %c0_21 = arith.constant 0 : index
    %c0_22 = arith.constant 0 : index
    %27 = vector.load %arg2[%c0_21, %c0_22] : memref<4x128xf32, #tpu.memory_space<vmem>>, vector<4x128xf32>
    %cst_23 = arith.constant dense<0.000000e+00> : vector<2x128xf32>
    %28 = tpu.matmul %26, %27, %cst_23 {dimension_numbers = #tpu.dot_dimension_numbers<[1], [0], [0], [1], [0, 0, 1, 1], [], []>} : vector<2x4xf32>, vector<4x128xf32>, vector<2x128xf32> -> vector<2x128xf32>
    %29 = arith.addf %28, %2 : vector<2x128xf32>
    %c0_24 = arith.constant 0 : index
    %c3 = arith.constant 3 : index
    %c0_25 = arith.constant 0 : index
    %30 = vector.load %arg0[%c0_24, %c3, %c0_25] : memref<2x8x4xf32, #tpu.memory_space<vmem>>, vector<2x1x4xf32>
    %31 = vector.shape_cast %30 : vector<2x1x4xf32> to vector<2x4xf32>
    %c0_26 = arith.constant 0 : index
    %c0_27 = arith.constant 0 : index
    %32 = vector.load %arg2[%c0_26, %c0_27] : memref<4x128xf32, #tpu.memory_space<vmem>>, vector<4x128xf32>
    %cst_28 = arith.constant dense<0.000000e+00> : vector<2x128xf32>
    %33 = tpu.matmul %31, %32, %cst_28 {dimension_numbers = #tpu.dot_dimension_numbers<[1], [0], [0], [1], [0, 0, 1, 1], [], []>} : vector<2x4xf32>, vector<4x128xf32>, vector<2x128xf32> -> vector<2x128xf32>
    %34 = arith.addf %33, %2 : vector<2x128xf32>
    %c0_29 = arith.constant 0 : index
    %c4 = arith.constant 4 : index
    %c0_30 = arith.constant 0 : index
    %35 = vector.load %arg0[%c0_29, %c4, %c0_30] : memref<2x8x4xf32, #tpu.memory_space<vmem>>, vector<2x1x4xf32>
    %36 = vector.shape_cast %35 : vector<2x1x4xf32> to vector<2x4xf32>
    %c0_31 = arith.constant 0 : index
    %c0_32 = arith.constant 0 : index
    %37 = vector.load %arg2[%c0_31, %c0_32] : memref<4x128xf32, #tpu.memory_space<vmem>>, vector<4x128xf32>
    %cst_33 = arith.constant dense<0.000000e+00> : vector<2x128xf32>
    %38 = tpu.matmul %36, %37, %cst_33 {dimension_numbers = #tpu.dot_dimension_numbers<[1], [0], [0], [1], [0, 0, 1, 1], [], []>} : vector<2x4xf32>, vector<4x128xf32>, vector<2x128xf32> -> vector<2x128xf32>
    %39 = arith.addf %38, %2 : vector<2x128xf32>
    %c0_34 = arith.constant 0 : index
    %c5 = arith.constant 5 : index
    %c0_35 = arith.constant 0 : index
    %40 = vector.load %arg0[%c0_34, %c5, %c0_35] : memref<2x8x4xf32, #tpu.memory_space<vmem>>, vector<2x1x4xf32>
    %41 = vector.shape_cast %40 : vector<2x1x4xf32> to vector<2x4xf32>
    %c0_36 = arith.constant 0 : index
    %c0_37 = arith.constant 0 : index
    %42 = vector.load %arg2[%c0_36, %c0_37] : memref<4x128xf32, #tpu.memory_space<vmem>>, vector<4x128xf32>
    %cst_38 = arith.constant dense<0.000000e+00> : vector<2x128xf32>
    %43 = tpu.matmul %41, %42, %cst_38 {dimension_numbers = #tpu.dot_dimension_numbers<[1], [0], [0], [1], [0, 0, 1, 1], [], []>} : vector<2x4xf32>, vector<4x128xf32>, vector<2x128xf32> -> vector<2x128xf32>
    %44 = arith.addf %43, %2 : vector<2x128xf32>
    %c0_39 = arith.constant 0 : index
    %c6 = arith.constant 6 : index
    %c0_40 = arith.constant 0 : index
    %45 = vector.load %arg0[%c0_39, %c6, %c0_40] : memref<2x8x4xf32, #tpu.memory_space<vmem>>, vector<2x1x4xf32>
    %46 = vector.shape_cast %45 : vector<2x1x4xf32> to vector<2x4xf32>
    %c0_41 = arith.constant 0 : index
    %c0_42 = arith.constant 0 : index
    %47 = vector.load %arg2[%c0_41, %c0_42] : memref<4x128xf32, #tpu.memory_space<vmem>>, vector<4x128xf32>
    %cst_43 = arith.constant dense<0.000000e+00> : vector<2x128xf32>
    %48 = tpu.matmul %46, %47, %cst_43 {dimension_numbers = #tpu.dot_dimension_numbers<[1], [0], [0], [1], [0, 0, 1, 1], [], []>} : vector<2x4xf32>, vector<4x128xf32>, vector<2x128xf32> -> vector<2x128xf32>
    %49 = arith.addf %48, %2 : vector<2x128xf32>
    %c0_44 = arith.constant 0 : index
    %c7 = arith.constant 7 : index
    %c0_45 = arith.constant 0 : index
    %50 = vector.load %arg0[%c0_44, %c7, %c0_45] : memref<2x8x4xf32, #tpu.memory_space<vmem>>, vector<2x1x4xf32>
    %51 = vector.shape_cast %50 : vector<2x1x4xf32> to vector<2x4xf32>
    %c0_46 = arith.constant 0 : index
    %c0_47 = arith.constant 0 : index
    %52 = vector.load %arg2[%c0_46, %c0_47] : memref<4x128xf32, #tpu.memory_space<vmem>>, vector<4x128xf32>
    %cst_48 = arith.constant dense<0.000000e+00> : vector<2x128xf32>
    %53 = tpu.matmul %51, %52, %cst_48 {dimension_numbers = #tpu.dot_dimension_numbers<[1], [0], [0], [1], [0, 0, 1, 1], [], []>} : vector<2x4xf32>, vector<4x128xf32>, vector<2x128xf32> -> vector<2x128xf32>
    %54 = arith.addf %53, %2 : vector<2x128xf32>
    %cst_49 = arith.constant 0.000000e+00 : f32
    %55 = vector.broadcast %cst_49 : f32 to vector<2x32xf32>
    %cst_50 = arith.constant 0.000000e+00 : f32
    %56 = vector.broadcast %cst_50 : f32 to vector<2x32xf32>
    %c0_51 = arith.constant 0 : index
    %c0_52 = arith.constant 0 : index
    %57 = vector.load %arg3[%c0_51, %c0_52] : memref<32x128xf32, #tpu.memory_space<vmem>>, vector<32x128xf32>
    %cst_53 = arith.constant dense<0.000000e+00> : vector<2x128xf32>
    %58 = tpu.matmul %55, %57, %cst_53 {dimension_numbers = #tpu.dot_dimension_numbers<[1], [0], [0], [1], [0, 0, 1, 1], [], []>} : vector<2x32xf32>, vector<32x128xf32>, vector<2x128xf32> -> vector<2x128xf32>
    %59 = arith.addf %19, %58 : vector<2x128xf32>
    %60 = vector.extract_strided_slice %59 {offsets = [0, 0], sizes = [2, 64], strides = [1, 1]} : vector<2x128xf32> to vector<2x64xf32>
    %61 = arith.negf %60 : vector<2x64xf32>
    %62 = math.exp %61 : vector<2x64xf32>
    %cst_54 = arith.constant 1.000000e+00 : f32
    %63 = vector.broadcast %cst_54 : f32 to vector<2x64xf32>
    %64 = arith.addf %63, %62 : vector<2x64xf32>
    %65 = arith.divf %63, %64 : vector<2x64xf32>
    %66 = vector.extract_strided_slice %65 {offsets = [0, 0], sizes = [2, 32], strides = [1, 1]} : vector<2x64xf32> to vector<2x32xf32>
    %67 = vector.extract_strided_slice %65 {offsets = [0, 32], sizes = [2, 32], strides = [1, 1]} : vector<2x64xf32> to vector<2x32xf32>
    %68 = vector.extract_strided_slice %59 {offsets = [0, 64], sizes = [2, 32], strides = [1, 1]} : vector<2x128xf32> to vector<2x32xf32>
    %69 = vector.extract_strided_slice %59 {offsets = [0, 96], sizes = [2, 32], strides = [1, 1]} : vector<2x128xf32> to vector<2x32xf32>
    %70 = arith.mulf %66, %69 : vector<2x32xf32>
    %71 = arith.addf %68, %70 : vector<2x32xf32>
    %72 = math.tanh %71 : vector<2x32xf32>
    %73 = arith.subf %55, %72 : vector<2x32xf32>
    %74 = arith.mulf %67, %73 : vector<2x32xf32>
    %75 = arith.addf %72, %74 : vector<2x32xf32>
    %76 = tpu.concatenate %75, %56 in 1 : vector<2x32xf32>, vector<2x32xf32> -> vector<2x64xf32>
    %c0_55 = arith.constant 0 : index
    %c0_56 = arith.constant 0 : index
    %77 = vector.load %arg5[%c0_55, %c0_56] : memref<64x128xf32, #tpu.memory_space<vmem>>, vector<64x128xf32>
    %cst_57 = arith.constant dense<0.000000e+00> : vector<2x128xf32>
    %78 = tpu.matmul %76, %77, %cst_57 {dimension_numbers = #tpu.dot_dimension_numbers<[1], [0], [0], [1], [0, 0, 1, 1], [], []>} : vector<2x64xf32>, vector<64x128xf32>, vector<2x128xf32> -> vector<2x128xf32>
    %79 = arith.addf %78, %5 : vector<2x128xf32>
    %80 = vector.extract_strided_slice %79 {offsets = [0, 0], sizes = [2, 64], strides = [1, 1]} : vector<2x128xf32> to vector<2x64xf32>
    %81 = arith.negf %80 : vector<2x64xf32>
    %82 = math.exp %81 : vector<2x64xf32>
    %cst_58 = arith.constant 1.000000e+00 : f32
    %83 = vector.broadcast %cst_58 : f32 to vector<2x64xf32>
    %84 = arith.addf %83, %82 : vector<2x64xf32>
    %85 = arith.divf %83, %84 : vector<2x64xf32>
    %86 = vector.extract_strided_slice %85 {offsets = [0, 0], sizes = [2, 32], strides = [1, 1]} : vector<2x64xf32> to vector<2x32xf32>
    %87 = vector.extract_strided_slice %85 {offsets = [0, 32], sizes = [2, 32], strides = [1, 1]} : vector<2x64xf32> to vector<2x32xf32>
    %88 = vector.extract_strided_slice %79 {offsets = [0, 64], sizes = [2, 32], strides = [1, 1]} : vector<2x128xf32> to vector<2x32xf32>
    %89 = vector.extract_strided_slice %79 {offsets = [0, 96], sizes = [2, 32], strides = [1, 1]} : vector<2x128xf32> to vector<2x32xf32>
    %90 = arith.mulf %86, %89 : vector<2x32xf32>
    %91 = arith.addf %88, %90 : vector<2x32xf32>
    %92 = math.tanh %91 : vector<2x32xf32>
    %93 = arith.subf %56, %92 : vector<2x32xf32>
    %94 = arith.mulf %87, %93 : vector<2x32xf32>
    %95 = arith.addf %92, %94 : vector<2x32xf32>
    %c0_59 = arith.constant 0 : index
    %c0_60 = arith.constant 0 : index
    %96 = vector.load %arg3[%c0_59, %c0_60] : memref<32x128xf32, #tpu.memory_space<vmem>>, vector<32x128xf32>
    %cst_61 = arith.constant dense<0.000000e+00> : vector<2x128xf32>
    %97 = tpu.matmul %75, %96, %cst_61 {dimension_numbers = #tpu.dot_dimension_numbers<[1], [0], [0], [1], [0, 0, 1, 1], [], []>} : vector<2x32xf32>, vector<32x128xf32>, vector<2x128xf32> -> vector<2x128xf32>
    %98 = arith.addf %24, %97 : vector<2x128xf32>
    %99 = vector.extract_strided_slice %98 {offsets = [0, 0], sizes = [2, 64], strides = [1, 1]} : vector<2x128xf32> to vector<2x64xf32>
    %100 = arith.negf %99 : vector<2x64xf32>
    %101 = math.exp %100 : vector<2x64xf32>
    %cst_62 = arith.constant 1.000000e+00 : f32
    %102 = vector.broadcast %cst_62 : f32 to vector<2x64xf32>
    %103 = arith.addf %102, %101 : vector<2x64xf32>
    %104 = arith.divf %102, %103 : vector<2x64xf32>
    %105 = vector.extract_strided_slice %104 {offsets = [0, 0], sizes = [2, 32], strides = [1, 1]} : vector<2x64xf32> to vector<2x32xf32>
    %106 = vector.extract_strided_slice %104 {offsets = [0, 32], sizes = [2, 32], strides = [1, 1]} : vector<2x64xf32> to vector<2x32xf32>
    %107 = vector.extract_strided_slice %98 {offsets = [0, 64], sizes = [2, 32], strides = [1, 1]} : vector<2x128xf32> to vector<2x32xf32>
    %108 = vector.extract_strided_slice %98 {offsets = [0, 96], sizes = [2, 32], strides = [1, 1]} : vector<2x128xf32> to vector<2x32xf32>
    %109 = arith.mulf %105, %108 : vector<2x32xf32>
    %110 = arith.addf %107, %109 : vector<2x32xf32>
    %111 = math.tanh %110 : vector<2x32xf32>
    %112 = arith.subf %75, %111 : vector<2x32xf32>
    %113 = arith.mulf %106, %112 : vector<2x32xf32>
    %114 = arith.addf %111, %113 : vector<2x32xf32>
    %115 = tpu.concatenate %114, %95 in 1 : vector<2x32xf32>, vector<2x32xf32> -> vector<2x64xf32>
    %c0_63 = arith.constant 0 : index
    %c0_64 = arith.constant 0 : index
    %116 = vector.load %arg5[%c0_63, %c0_64] : memref<64x128xf32, #tpu.memory_space<vmem>>, vector<64x128xf32>
    %cst_65 = arith.constant dense<0.000000e+00> : vector<2x128xf32>
    %117 = tpu.matmul %115, %116, %cst_65 {dimension_numbers = #tpu.dot_dimension_numbers<[1], [0], [0], [1], [0, 0, 1, 1], [], []>} : vector<2x64xf32>, vector<64x128xf32>, vector<2x128xf32> -> vector<2x128xf32>
    %118 = arith.addf %117, %5 : vector<2x128xf32>
    %119 = vector.extract_strided_slice %118 {offsets = [0, 0], sizes = [2, 64], strides = [1, 1]} : vector<2x128xf32> to vector<2x64xf32>
    %120 = arith.negf %119 : vector<2x64xf32>
    %121 = math.exp %120 : vector<2x64xf32>
    %cst_66 = arith.constant 1.000000e+00 : f32
    %122 = vector.broadcast %cst_66 : f32 to vector<2x64xf32>
    %123 = arith.addf %122, %121 : vector<2x64xf32>
    %124 = arith.divf %122, %123 : vector<2x64xf32>
    %125 = vector.extract_strided_slice %124 {offsets = [0, 0], sizes = [2, 32], strides = [1, 1]} : vector<2x64xf32> to vector<2x32xf32>
    %126 = vector.extract_strided_slice %124 {offsets = [0, 32], sizes = [2, 32], strides = [1, 1]} : vector<2x64xf32> to vector<2x32xf32>
    %127 = vector.extract_strided_slice %118 {offsets = [0, 64], sizes = [2, 32], strides = [1, 1]} : vector<2x128xf32> to vector<2x32xf32>
    %128 = vector.extract_strided_slice %118 {offsets = [0, 96], sizes = [2, 32], strides = [1, 1]} : vector<2x128xf32> to vector<2x32xf32>
    %129 = arith.mulf %125, %128 : vector<2x32xf32>
    %130 = arith.addf %127, %129 : vector<2x32xf32>
    %131 = math.tanh %130 : vector<2x32xf32>
    %132 = arith.subf %95, %131 : vector<2x32xf32>
    %133 = arith.mulf %126, %132 : vector<2x32xf32>
    %134 = arith.addf %131, %133 : vector<2x32xf32>
    %c0_67 = arith.constant 0 : index
    %c0_68 = arith.constant 0 : index
    %135 = vector.load %arg3[%c0_67, %c0_68] : memref<32x128xf32, #tpu.memory_space<vmem>>, vector<32x128xf32>
    %cst_69 = arith.constant dense<0.000000e+00> : vector<2x128xf32>
    %136 = tpu.matmul %114, %135, %cst_69 {dimension_numbers = #tpu.dot_dimension_numbers<[1], [0], [0], [1], [0, 0, 1, 1], [], []>} : vector<2x32xf32>, vector<32x128xf32>, vector<2x128xf32> -> vector<2x128xf32>
    %137 = arith.addf %29, %136 : vector<2x128xf32>
    %138 = vector.extract_strided_slice %137 {offsets = [0, 0], sizes = [2, 64], strides = [1, 1]} : vector<2x128xf32> to vector<2x64xf32>
    %139 = arith.negf %138 : vector<2x64xf32>
    %140 = math.exp %139 : vector<2x64xf32>
    %cst_70 = arith.constant 1.000000e+00 : f32
    %141 = vector.broadcast %cst_70 : f32 to vector<2x64xf32>
    %142 = arith.addf %141, %140 : vector<2x64xf32>
    %143 = arith.divf %141, %142 : vector<2x64xf32>
    %144 = vector.extract_strided_slice %143 {offsets = [0, 0], sizes = [2, 32], strides = [1, 1]} : vector<2x64xf32> to vector<2x32xf32>
    %145 = vector.extract_strided_slice %143 {offsets = [0, 32], sizes = [2, 32], strides = [1, 1]} : vector<2x64xf32> to vector<2x32xf32>
    %146 = vector.extract_strided_slice %137 {offsets = [0, 64], sizes = [2, 32], strides = [1, 1]} : vector<2x128xf32> to vector<2x32xf32>
    %147 = vector.extract_strided_slice %137 {offsets = [0, 96], sizes = [2, 32], strides = [1, 1]} : vector<2x128xf32> to vector<2x32xf32>
    %148 = arith.mulf %144, %147 : vector<2x32xf32>
    %149 = arith.addf %146, %148 : vector<2x32xf32>
    %150 = math.tanh %149 : vector<2x32xf32>
    %151 = arith.subf %114, %150 : vector<2x32xf32>
    %152 = arith.mulf %145, %151 : vector<2x32xf32>
    %153 = arith.addf %150, %152 : vector<2x32xf32>
    %154 = tpu.concatenate %153, %134 in 1 : vector<2x32xf32>, vector<2x32xf32> -> vector<2x64xf32>
    %c0_71 = arith.constant 0 : index
    %c0_72 = arith.constant 0 : index
    %155 = vector.load %arg5[%c0_71, %c0_72] : memref<64x128xf32, #tpu.memory_space<vmem>>, vector<64x128xf32>
    %cst_73 = arith.constant dense<0.000000e+00> : vector<2x128xf32>
    %156 = tpu.matmul %154, %155, %cst_73 {dimension_numbers = #tpu.dot_dimension_numbers<[1], [0], [0], [1], [0, 0, 1, 1], [], []>} : vector<2x64xf32>, vector<64x128xf32>, vector<2x128xf32> -> vector<2x128xf32>
    %157 = arith.addf %156, %5 : vector<2x128xf32>
    %158 = vector.extract_strided_slice %157 {offsets = [0, 0], sizes = [2, 64], strides = [1, 1]} : vector<2x128xf32> to vector<2x64xf32>
    %159 = arith.negf %158 : vector<2x64xf32>
    %160 = math.exp %159 : vector<2x64xf32>
    %cst_74 = arith.constant 1.000000e+00 : f32
    %161 = vector.broadcast %cst_74 : f32 to vector<2x64xf32>
    %162 = arith.addf %161, %160 : vector<2x64xf32>
    %163 = arith.divf %161, %162 : vector<2x64xf32>
    %164 = vector.extract_strided_slice %163 {offsets = [0, 0], sizes = [2, 32], strides = [1, 1]} : vector<2x64xf32> to vector<2x32xf32>
    %165 = vector.extract_strided_slice %163 {offsets = [0, 32], sizes = [2, 32], strides = [1, 1]} : vector<2x64xf32> to vector<2x32xf32>
    %166 = vector.extract_strided_slice %157 {offsets = [0, 64], sizes = [2, 32], strides = [1, 1]} : vector<2x128xf32> to vector<2x32xf32>
    %167 = vector.extract_strided_slice %157 {offsets = [0, 96], sizes = [2, 32], strides = [1, 1]} : vector<2x128xf32> to vector<2x32xf32>
    %168 = arith.mulf %164, %167 : vector<2x32xf32>
    %169 = arith.addf %166, %168 : vector<2x32xf32>
    %170 = math.tanh %169 : vector<2x32xf32>
    %171 = arith.subf %134, %170 : vector<2x32xf32>
    %172 = arith.mulf %165, %171 : vector<2x32xf32>
    %173 = arith.addf %170, %172 : vector<2x32xf32>
    %c0_75 = arith.constant 0 : index
    %c0_76 = arith.constant 0 : index
    %174 = vector.load %arg3[%c0_75, %c0_76] : memref<32x128xf32, #tpu.memory_space<vmem>>, vector<32x128xf32>
    %cst_77 = arith.constant dense<0.000000e+00> : vector<2x128xf32>
    %175 = tpu.matmul %153, %174, %cst_77 {dimension_numbers = #tpu.dot_dimension_numbers<[1], [0], [0], [1], [0, 0, 1, 1], [], []>} : vector<2x32xf32>, vector<32x128xf32>, vector<2x128xf32> -> vector<2x128xf32>
    %176 = arith.addf %34, %175 : vector<2x128xf32>
    %177 = vector.extract_strided_slice %176 {offsets = [0, 0], sizes = [2, 64], strides = [1, 1]} : vector<2x128xf32> to vector<2x64xf32>
    %178 = arith.negf %177 : vector<2x64xf32>
    %179 = math.exp %178 : vector<2x64xf32>
    %cst_78 = arith.constant 1.000000e+00 : f32
    %180 = vector.broadcast %cst_78 : f32 to vector<2x64xf32>
    %181 = arith.addf %180, %179 : vector<2x64xf32>
    %182 = arith.divf %180, %181 : vector<2x64xf32>
    %183 = vector.extract_strided_slice %182 {offsets = [0, 0], sizes = [2, 32], strides = [1, 1]} : vector<2x64xf32> to vector<2x32xf32>
    %184 = vector.extract_strided_slice %182 {offsets = [0, 32], sizes = [2, 32], strides = [1, 1]} : vector<2x64xf32> to vector<2x32xf32>
    %185 = vector.extract_strided_slice %176 {offsets = [0, 64], sizes = [2, 32], strides = [1, 1]} : vector<2x128xf32> to vector<2x32xf32>
    %186 = vector.extract_strided_slice %176 {offsets = [0, 96], sizes = [2, 32], strides = [1, 1]} : vector<2x128xf32> to vector<2x32xf32>
    %187 = arith.mulf %183, %186 : vector<2x32xf32>
    %188 = arith.addf %185, %187 : vector<2x32xf32>
    %189 = math.tanh %188 : vector<2x32xf32>
    %190 = arith.subf %153, %189 : vector<2x32xf32>
    %191 = arith.mulf %184, %190 : vector<2x32xf32>
    %192 = arith.addf %189, %191 : vector<2x32xf32>
    %193 = tpu.concatenate %192, %173 in 1 : vector<2x32xf32>, vector<2x32xf32> -> vector<2x64xf32>
    %c0_79 = arith.constant 0 : index
    %c0_80 = arith.constant 0 : index
    %194 = vector.load %arg5[%c0_79, %c0_80] : memref<64x128xf32, #tpu.memory_space<vmem>>, vector<64x128xf32>
    %cst_81 = arith.constant dense<0.000000e+00> : vector<2x128xf32>
    %195 = tpu.matmul %193, %194, %cst_81 {dimension_numbers = #tpu.dot_dimension_numbers<[1], [0], [0], [1], [0, 0, 1, 1], [], []>} : vector<2x64xf32>, vector<64x128xf32>, vector<2x128xf32> -> vector<2x128xf32>
    %196 = arith.addf %195, %5 : vector<2x128xf32>
    %197 = vector.extract_strided_slice %196 {offsets = [0, 0], sizes = [2, 64], strides = [1, 1]} : vector<2x128xf32> to vector<2x64xf32>
    %198 = arith.negf %197 : vector<2x64xf32>
    %199 = math.exp %198 : vector<2x64xf32>
    %cst_82 = arith.constant 1.000000e+00 : f32
    %200 = vector.broadcast %cst_82 : f32 to vector<2x64xf32>
    %201 = arith.addf %200, %199 : vector<2x64xf32>
    %202 = arith.divf %200, %201 : vector<2x64xf32>
    %203 = vector.extract_strided_slice %202 {offsets = [0, 0], sizes = [2, 32], strides = [1, 1]} : vector<2x64xf32> to vector<2x32xf32>
    %204 = vector.extract_strided_slice %202 {offsets = [0, 32], sizes = [2, 32], strides = [1, 1]} : vector<2x64xf32> to vector<2x32xf32>
    %205 = vector.extract_strided_slice %196 {offsets = [0, 64], sizes = [2, 32], strides = [1, 1]} : vector<2x128xf32> to vector<2x32xf32>
    %206 = vector.extract_strided_slice %196 {offsets = [0, 96], sizes = [2, 32], strides = [1, 1]} : vector<2x128xf32> to vector<2x32xf32>
    %207 = arith.mulf %203, %206 : vector<2x32xf32>
    %208 = arith.addf %205, %207 : vector<2x32xf32>
    %209 = math.tanh %208 : vector<2x32xf32>
    %210 = arith.subf %173, %209 : vector<2x32xf32>
    %211 = arith.mulf %204, %210 : vector<2x32xf32>
    %212 = arith.addf %209, %211 : vector<2x32xf32>
    %c0_83 = arith.constant 0 : index
    %c0_84 = arith.constant 0 : index
    %213 = vector.load %arg3[%c0_83, %c0_84] : memref<32x128xf32, #tpu.memory_space<vmem>>, vector<32x128xf32>
    %cst_85 = arith.constant dense<0.000000e+00> : vector<2x128xf32>
    %214 = tpu.matmul %192, %213, %cst_85 {dimension_numbers = #tpu.dot_dimension_numbers<[1], [0], [0], [1], [0, 0, 1, 1], [], []>} : vector<2x32xf32>, vector<32x128xf32>, vector<2x128xf32> -> vector<2x128xf32>
    %215 = arith.addf %39, %214 : vector<2x128xf32>
    %216 = vector.extract_strided_slice %215 {offsets = [0, 0], sizes = [2, 64], strides = [1, 1]} : vector<2x128xf32> to vector<2x64xf32>
    %217 = arith.negf %216 : vector<2x64xf32>
    %218 = math.exp %217 : vector<2x64xf32>
    %cst_86 = arith.constant 1.000000e+00 : f32
    %219 = vector.broadcast %cst_86 : f32 to vector<2x64xf32>
    %220 = arith.addf %219, %218 : vector<2x64xf32>
    %221 = arith.divf %219, %220 : vector<2x64xf32>
    %222 = vector.extract_strided_slice %221 {offsets = [0, 0], sizes = [2, 32], strides = [1, 1]} : vector<2x64xf32> to vector<2x32xf32>
    %223 = vector.extract_strided_slice %221 {offsets = [0, 32], sizes = [2, 32], strides = [1, 1]} : vector<2x64xf32> to vector<2x32xf32>
    %224 = vector.extract_strided_slice %215 {offsets = [0, 64], sizes = [2, 32], strides = [1, 1]} : vector<2x128xf32> to vector<2x32xf32>
    %225 = vector.extract_strided_slice %215 {offsets = [0, 96], sizes = [2, 32], strides = [1, 1]} : vector<2x128xf32> to vector<2x32xf32>
    %226 = arith.mulf %222, %225 : vector<2x32xf32>
    %227 = arith.addf %224, %226 : vector<2x32xf32>
    %228 = math.tanh %227 : vector<2x32xf32>
    %229 = arith.subf %192, %228 : vector<2x32xf32>
    %230 = arith.mulf %223, %229 : vector<2x32xf32>
    %231 = arith.addf %228, %230 : vector<2x32xf32>
    %232 = tpu.concatenate %231, %212 in 1 : vector<2x32xf32>, vector<2x32xf32> -> vector<2x64xf32>
    %c0_87 = arith.constant 0 : index
    %c0_88 = arith.constant 0 : index
    %233 = vector.load %arg5[%c0_87, %c0_88] : memref<64x128xf32, #tpu.memory_space<vmem>>, vector<64x128xf32>
    %cst_89 = arith.constant dense<0.000000e+00> : vector<2x128xf32>
    %234 = tpu.matmul %232, %233, %cst_89 {dimension_numbers = #tpu.dot_dimension_numbers<[1], [0], [0], [1], [0, 0, 1, 1], [], []>} : vector<2x64xf32>, vector<64x128xf32>, vector<2x128xf32> -> vector<2x128xf32>
    %235 = arith.addf %234, %5 : vector<2x128xf32>
    %236 = vector.extract_strided_slice %235 {offsets = [0, 0], sizes = [2, 64], strides = [1, 1]} : vector<2x128xf32> to vector<2x64xf32>
    %237 = arith.negf %236 : vector<2x64xf32>
    %238 = math.exp %237 : vector<2x64xf32>
    %cst_90 = arith.constant 1.000000e+00 : f32
    %239 = vector.broadcast %cst_90 : f32 to vector<2x64xf32>
    %240 = arith.addf %239, %238 : vector<2x64xf32>
    %241 = arith.divf %239, %240 : vector<2x64xf32>
    %242 = vector.extract_strided_slice %241 {offsets = [0, 0], sizes = [2, 32], strides = [1, 1]} : vector<2x64xf32> to vector<2x32xf32>
    %243 = vector.extract_strided_slice %241 {offsets = [0, 32], sizes = [2, 32], strides = [1, 1]} : vector<2x64xf32> to vector<2x32xf32>
    %244 = vector.extract_strided_slice %235 {offsets = [0, 64], sizes = [2, 32], strides = [1, 1]} : vector<2x128xf32> to vector<2x32xf32>
    %245 = vector.extract_strided_slice %235 {offsets = [0, 96], sizes = [2, 32], strides = [1, 1]} : vector<2x128xf32> to vector<2x32xf32>
    %246 = arith.mulf %242, %245 : vector<2x32xf32>
    %247 = arith.addf %244, %246 : vector<2x32xf32>
    %248 = math.tanh %247 : vector<2x32xf32>
    %249 = arith.subf %212, %248 : vector<2x32xf32>
    %250 = arith.mulf %243, %249 : vector<2x32xf32>
    %251 = arith.addf %248, %250 : vector<2x32xf32>
    %c0_91 = arith.constant 0 : index
    %c0_92 = arith.constant 0 : index
    %252 = vector.load %arg3[%c0_91, %c0_92] : memref<32x128xf32, #tpu.memory_space<vmem>>, vector<32x128xf32>
    %cst_93 = arith.constant dense<0.000000e+00> : vector<2x128xf32>
    %253 = tpu.matmul %231, %252, %cst_93 {dimension_numbers = #tpu.dot_dimension_numbers<[1], [0], [0], [1], [0, 0, 1, 1], [], []>} : vector<2x32xf32>, vector<32x128xf32>, vector<2x128xf32> -> vector<2x128xf32>
    %254 = arith.addf %44, %253 : vector<2x128xf32>
    %255 = vector.extract_strided_slice %254 {offsets = [0, 0], sizes = [2, 64], strides = [1, 1]} : vector<2x128xf32> to vector<2x64xf32>
    %256 = arith.negf %255 : vector<2x64xf32>
    %257 = math.exp %256 : vector<2x64xf32>
    %cst_94 = arith.constant 1.000000e+00 : f32
    %258 = vector.broadcast %cst_94 : f32 to vector<2x64xf32>
    %259 = arith.addf %258, %257 : vector<2x64xf32>
    %260 = arith.divf %258, %259 : vector<2x64xf32>
    %261 = vector.extract_strided_slice %260 {offsets = [0, 0], sizes = [2, 32], strides = [1, 1]} : vector<2x64xf32> to vector<2x32xf32>
    %262 = vector.extract_strided_slice %260 {offsets = [0, 32], sizes = [2, 32], strides = [1, 1]} : vector<2x64xf32> to vector<2x32xf32>
    %263 = vector.extract_strided_slice %254 {offsets = [0, 64], sizes = [2, 32], strides = [1, 1]} : vector<2x128xf32> to vector<2x32xf32>
    %264 = vector.extract_strided_slice %254 {offsets = [0, 96], sizes = [2, 32], strides = [1, 1]} : vector<2x128xf32> to vector<2x32xf32>
    %265 = arith.mulf %261, %264 : vector<2x32xf32>
    %266 = arith.addf %263, %265 : vector<2x32xf32>
    %267 = math.tanh %266 : vector<2x32xf32>
    %268 = arith.subf %231, %267 : vector<2x32xf32>
    %269 = arith.mulf %262, %268 : vector<2x32xf32>
    %270 = arith.addf %267, %269 : vector<2x32xf32>
    %271 = tpu.concatenate %270, %251 in 1 : vector<2x32xf32>, vector<2x32xf32> -> vector<2x64xf32>
    %c0_95 = arith.constant 0 : index
    %c0_96 = arith.constant 0 : index
    %272 = vector.load %arg5[%c0_95, %c0_96] : memref<64x128xf32, #tpu.memory_space<vmem>>, vector<64x128xf32>
    %cst_97 = arith.constant dense<0.000000e+00> : vector<2x128xf32>
    %273 = tpu.matmul %271, %272, %cst_97 {dimension_numbers = #tpu.dot_dimension_numbers<[1], [0], [0], [1], [0, 0, 1, 1], [], []>} : vector<2x64xf32>, vector<64x128xf32>, vector<2x128xf32> -> vector<2x128xf32>
    %274 = arith.addf %273, %5 : vector<2x128xf32>
    %275 = vector.extract_strided_slice %274 {offsets = [0, 0], sizes = [2, 64], strides = [1, 1]} : vector<2x128xf32> to vector<2x64xf32>
    %276 = arith.negf %275 : vector<2x64xf32>
    %277 = math.exp %276 : vector<2x64xf32>
    %cst_98 = arith.constant 1.000000e+00 : f32
    %278 = vector.broadcast %cst_98 : f32 to vector<2x64xf32>
    %279 = arith.addf %278, %277 : vector<2x64xf32>
    %280 = arith.divf %278, %279 : vector<2x64xf32>
    %281 = vector.extract_strided_slice %280 {offsets = [0, 0], sizes = [2, 32], strides = [1, 1]} : vector<2x64xf32> to vector<2x32xf32>
    %282 = vector.extract_strided_slice %280 {offsets = [0, 32], sizes = [2, 32], strides = [1, 1]} : vector<2x64xf32> to vector<2x32xf32>
    %283 = vector.extract_strided_slice %274 {offsets = [0, 64], sizes = [2, 32], strides = [1, 1]} : vector<2x128xf32> to vector<2x32xf32>
    %284 = vector.extract_strided_slice %274 {offsets = [0, 96], sizes = [2, 32], strides = [1, 1]} : vector<2x128xf32> to vector<2x32xf32>
    %285 = arith.mulf %281, %284 : vector<2x32xf32>
    %286 = arith.addf %283, %285 : vector<2x32xf32>
    %287 = math.tanh %286 : vector<2x32xf32>
    %288 = arith.subf %251, %287 : vector<2x32xf32>
    %289 = arith.mulf %282, %288 : vector<2x32xf32>
    %290 = arith.addf %287, %289 : vector<2x32xf32>
    %c0_99 = arith.constant 0 : index
    %c0_100 = arith.constant 0 : index
    %291 = vector.load %arg3[%c0_99, %c0_100] : memref<32x128xf32, #tpu.memory_space<vmem>>, vector<32x128xf32>
    %cst_101 = arith.constant dense<0.000000e+00> : vector<2x128xf32>
    %292 = tpu.matmul %270, %291, %cst_101 {dimension_numbers = #tpu.dot_dimension_numbers<[1], [0], [0], [1], [0, 0, 1, 1], [], []>} : vector<2x32xf32>, vector<32x128xf32>, vector<2x128xf32> -> vector<2x128xf32>
    %293 = arith.addf %49, %292 : vector<2x128xf32>
    %294 = vector.extract_strided_slice %293 {offsets = [0, 0], sizes = [2, 64], strides = [1, 1]} : vector<2x128xf32> to vector<2x64xf32>
    %295 = arith.negf %294 : vector<2x64xf32>
    %296 = math.exp %295 : vector<2x64xf32>
    %cst_102 = arith.constant 1.000000e+00 : f32
    %297 = vector.broadcast %cst_102 : f32 to vector<2x64xf32>
    %298 = arith.addf %297, %296 : vector<2x64xf32>
    %299 = arith.divf %297, %298 : vector<2x64xf32>
    %300 = vector.extract_strided_slice %299 {offsets = [0, 0], sizes = [2, 32], strides = [1, 1]} : vector<2x64xf32> to vector<2x32xf32>
    %301 = vector.extract_strided_slice %299 {offsets = [0, 32], sizes = [2, 32], strides = [1, 1]} : vector<2x64xf32> to vector<2x32xf32>
    %302 = vector.extract_strided_slice %293 {offsets = [0, 64], sizes = [2, 32], strides = [1, 1]} : vector<2x128xf32> to vector<2x32xf32>
    %303 = vector.extract_strided_slice %293 {offsets = [0, 96], sizes = [2, 32], strides = [1, 1]} : vector<2x128xf32> to vector<2x32xf32>
    %304 = arith.mulf %300, %303 : vector<2x32xf32>
    %305 = arith.addf %302, %304 : vector<2x32xf32>
    %306 = math.tanh %305 : vector<2x32xf32>
    %307 = arith.subf %270, %306 : vector<2x32xf32>
    %308 = arith.mulf %301, %307 : vector<2x32xf32>
    %309 = arith.addf %306, %308 : vector<2x32xf32>
    %310 = tpu.concatenate %309, %290 in 1 : vector<2x32xf32>, vector<2x32xf32> -> vector<2x64xf32>
    %c0_103 = arith.constant 0 : index
    %c0_104 = arith.constant 0 : index
    %311 = vector.load %arg5[%c0_103, %c0_104] : memref<64x128xf32, #tpu.memory_space<vmem>>, vector<64x128xf32>
    %cst_105 = arith.constant dense<0.000000e+00> : vector<2x128xf32>
    %312 = tpu.matmul %310, %311, %cst_105 {dimension_numbers = #tpu.dot_dimension_numbers<[1], [0], [0], [1], [0, 0, 1, 1], [], []>} : vector<2x64xf32>, vector<64x128xf32>, vector<2x128xf32> -> vector<2x128xf32>
    %313 = arith.addf %312, %5 : vector<2x128xf32>
    %314 = vector.extract_strided_slice %313 {offsets = [0, 0], sizes = [2, 64], strides = [1, 1]} : vector<2x128xf32> to vector<2x64xf32>
    %315 = arith.negf %314 : vector<2x64xf32>
    %316 = math.exp %315 : vector<2x64xf32>
    %cst_106 = arith.constant 1.000000e+00 : f32
    %317 = vector.broadcast %cst_106 : f32 to vector<2x64xf32>
    %318 = arith.addf %317, %316 : vector<2x64xf32>
    %319 = arith.divf %317, %318 : vector<2x64xf32>
    %320 = vector.extract_strided_slice %319 {offsets = [0, 0], sizes = [2, 32], strides = [1, 1]} : vector<2x64xf32> to vector<2x32xf32>
    %321 = vector.extract_strided_slice %319 {offsets = [0, 32], sizes = [2, 32], strides = [1, 1]} : vector<2x64xf32> to vector<2x32xf32>
    %322 = vector.extract_strided_slice %313 {offsets = [0, 64], sizes = [2, 32], strides = [1, 1]} : vector<2x128xf32> to vector<2x32xf32>
    %323 = vector.extract_strided_slice %313 {offsets = [0, 96], sizes = [2, 32], strides = [1, 1]} : vector<2x128xf32> to vector<2x32xf32>
    %324 = arith.mulf %320, %323 : vector<2x32xf32>
    %325 = arith.addf %322, %324 : vector<2x32xf32>
    %326 = math.tanh %325 : vector<2x32xf32>
    %327 = arith.subf %290, %326 : vector<2x32xf32>
    %328 = arith.mulf %321, %327 : vector<2x32xf32>
    %329 = arith.addf %326, %328 : vector<2x32xf32>
    %c0_107 = arith.constant 0 : index
    %c0_108 = arith.constant 0 : index
    %330 = vector.load %arg3[%c0_107, %c0_108] : memref<32x128xf32, #tpu.memory_space<vmem>>, vector<32x128xf32>
    %cst_109 = arith.constant dense<0.000000e+00> : vector<2x128xf32>
    %331 = tpu.matmul %309, %330, %cst_109 {dimension_numbers = #tpu.dot_dimension_numbers<[1], [0], [0], [1], [0, 0, 1, 1], [], []>} : vector<2x32xf32>, vector<32x128xf32>, vector<2x128xf32> -> vector<2x128xf32>
    %332 = arith.addf %54, %331 : vector<2x128xf32>
    %333 = vector.extract_strided_slice %332 {offsets = [0, 0], sizes = [2, 64], strides = [1, 1]} : vector<2x128xf32> to vector<2x64xf32>
    %334 = arith.negf %333 : vector<2x64xf32>
    %335 = math.exp %334 : vector<2x64xf32>
    %cst_110 = arith.constant 1.000000e+00 : f32
    %336 = vector.broadcast %cst_110 : f32 to vector<2x64xf32>
    %337 = arith.addf %336, %335 : vector<2x64xf32>
    %338 = arith.divf %336, %337 : vector<2x64xf32>
    %339 = vector.extract_strided_slice %338 {offsets = [0, 0], sizes = [2, 32], strides = [1, 1]} : vector<2x64xf32> to vector<2x32xf32>
    %340 = vector.extract_strided_slice %338 {offsets = [0, 32], sizes = [2, 32], strides = [1, 1]} : vector<2x64xf32> to vector<2x32xf32>
    %341 = vector.extract_strided_slice %332 {offsets = [0, 64], sizes = [2, 32], strides = [1, 1]} : vector<2x128xf32> to vector<2x32xf32>
    %342 = vector.extract_strided_slice %332 {offsets = [0, 96], sizes = [2, 32], strides = [1, 1]} : vector<2x128xf32> to vector<2x32xf32>
    %343 = arith.mulf %339, %342 : vector<2x32xf32>
    %344 = arith.addf %341, %343 : vector<2x32xf32>
    %345 = math.tanh %344 : vector<2x32xf32>
    %346 = arith.subf %309, %345 : vector<2x32xf32>
    %347 = arith.mulf %340, %346 : vector<2x32xf32>
    %348 = arith.addf %345, %347 : vector<2x32xf32>
    %349 = tpu.concatenate %348, %329 in 1 : vector<2x32xf32>, vector<2x32xf32> -> vector<2x64xf32>
    %c0_111 = arith.constant 0 : index
    %c0_112 = arith.constant 0 : index
    %350 = vector.load %arg5[%c0_111, %c0_112] : memref<64x128xf32, #tpu.memory_space<vmem>>, vector<64x128xf32>
    %cst_113 = arith.constant dense<0.000000e+00> : vector<2x128xf32>
    %351 = tpu.matmul %349, %350, %cst_113 {dimension_numbers = #tpu.dot_dimension_numbers<[1], [0], [0], [1], [0, 0, 1, 1], [], []>} : vector<2x64xf32>, vector<64x128xf32>, vector<2x128xf32> -> vector<2x128xf32>
    %352 = arith.addf %351, %5 : vector<2x128xf32>
    %353 = vector.extract_strided_slice %352 {offsets = [0, 0], sizes = [2, 64], strides = [1, 1]} : vector<2x128xf32> to vector<2x64xf32>
    %354 = arith.negf %353 : vector<2x64xf32>
    %355 = math.exp %354 : vector<2x64xf32>
    %cst_114 = arith.constant 1.000000e+00 : f32
    %356 = vector.broadcast %cst_114 : f32 to vector<2x64xf32>
    %357 = arith.addf %356, %355 : vector<2x64xf32>
    %358 = arith.divf %356, %357 : vector<2x64xf32>
    %359 = vector.extract_strided_slice %358 {offsets = [0, 0], sizes = [2, 32], strides = [1, 1]} : vector<2x64xf32> to vector<2x32xf32>
    %360 = vector.extract_strided_slice %358 {offsets = [0, 32], sizes = [2, 32], strides = [1, 1]} : vector<2x64xf32> to vector<2x32xf32>
    %361 = vector.extract_strided_slice %352 {offsets = [0, 64], sizes = [2, 32], strides = [1, 1]} : vector<2x128xf32> to vector<2x32xf32>
    %362 = vector.extract_strided_slice %352 {offsets = [0, 96], sizes = [2, 32], strides = [1, 1]} : vector<2x128xf32> to vector<2x32xf32>
    %363 = arith.mulf %359, %362 : vector<2x32xf32>
    %364 = arith.addf %361, %363 : vector<2x32xf32>
    %365 = math.tanh %364 : vector<2x32xf32>
    %366 = arith.subf %329, %365 : vector<2x32xf32>
    %367 = arith.mulf %360, %366 : vector<2x32xf32>
    %368 = arith.addf %365, %367 : vector<2x32xf32>
    %c0_115 = arith.constant 0 : index
    %c0_116 = arith.constant 0 : index
    %369 = vector.load %arg11[%c0_115, %c0_116] : memref<32x3xf32, #tpu.memory_space<vmem>>, vector<32x3xf32>
    %c0_117 = arith.constant 0 : index
    %c0_118 = arith.constant 0 : index
    %370 = vector.load %arg1[%c0_117, %c0_118] : memref<2x3xf32, #tpu.memory_space<vmem>>, vector<2x3xf32>
    %371 = tpu.concatenate %370, %348 in 1 : vector<2x3xf32>, vector<2x32xf32> -> vector<2x35xf32>
    %c0_119 = arith.constant 0 : index
    %c0_120 = arith.constant 0 : index
    %372 = vector.load %arg7[%c0_119, %c0_120] : memref<35x128xf32, #tpu.memory_space<vmem>>, vector<35x128xf32>
    %cst_121 = arith.constant dense<0.000000e+00> : vector<2x128xf32>
    %373 = tpu.matmul %371, %372, %cst_121 {dimension_numbers = #tpu.dot_dimension_numbers<[1], [0], [0], [1], [0, 0, 1, 1], [], []>} : vector<2x35xf32>, vector<35x128xf32>, vector<2x128xf32> -> vector<2x128xf32>
    %374 = arith.addf %373, %8 : vector<2x128xf32>
    %375 = vector.extract_strided_slice %374 {offsets = [0, 0], sizes = [2, 64], strides = [1, 1]} : vector<2x128xf32> to vector<2x64xf32>
    %376 = arith.negf %375 : vector<2x64xf32>
    %377 = math.exp %376 : vector<2x64xf32>
    %cst_122 = arith.constant 1.000000e+00 : f32
    %378 = vector.broadcast %cst_122 : f32 to vector<2x64xf32>
    %379 = arith.addf %378, %377 : vector<2x64xf32>
    %380 = arith.divf %378, %379 : vector<2x64xf32>
    %381 = vector.extract_strided_slice %380 {offsets = [0, 0], sizes = [2, 32], strides = [1, 1]} : vector<2x64xf32> to vector<2x32xf32>
    %382 = vector.extract_strided_slice %380 {offsets = [0, 32], sizes = [2, 32], strides = [1, 1]} : vector<2x64xf32> to vector<2x32xf32>
    %383 = vector.extract_strided_slice %374 {offsets = [0, 64], sizes = [2, 32], strides = [1, 1]} : vector<2x128xf32> to vector<2x32xf32>
    %384 = vector.extract_strided_slice %374 {offsets = [0, 96], sizes = [2, 32], strides = [1, 1]} : vector<2x128xf32> to vector<2x32xf32>
    %385 = arith.mulf %381, %384 : vector<2x32xf32>
    %386 = arith.addf %383, %385 : vector<2x32xf32>
    %387 = math.tanh %386 : vector<2x32xf32>
    %388 = arith.subf %348, %387 : vector<2x32xf32>
    %389 = arith.mulf %382, %388 : vector<2x32xf32>
    %390 = arith.addf %387, %389 : vector<2x32xf32>
    %391 = tpu.concatenate %390, %368 in 1 : vector<2x32xf32>, vector<2x32xf32> -> vector<2x64xf32>
    %c0_123 = arith.constant 0 : index
    %c0_124 = arith.constant 0 : index
    %392 = vector.load %arg9[%c0_123, %c0_124] : memref<64x128xf32, #tpu.memory_space<vmem>>, vector<64x128xf32>
    %cst_125 = arith.constant dense<0.000000e+00> : vector<2x128xf32>
    %393 = tpu.matmul %391, %392, %cst_125 {dimension_numbers = #tpu.dot_dimension_numbers<[1], [0], [0], [1], [0, 0, 1, 1], [], []>} : vector<2x64xf32>, vector<64x128xf32>, vector<2x128xf32> -> vector<2x128xf32>
    %394 = arith.addf %393, %11 : vector<2x128xf32>
    %395 = vector.extract_strided_slice %394 {offsets = [0, 0], sizes = [2, 64], strides = [1, 1]} : vector<2x128xf32> to vector<2x64xf32>
    %396 = arith.negf %395 : vector<2x64xf32>
    %397 = math.exp %396 : vector<2x64xf32>
    %cst_126 = arith.constant 1.000000e+00 : f32
    %398 = vector.broadcast %cst_126 : f32 to vector<2x64xf32>
    %399 = arith.addf %398, %397 : vector<2x64xf32>
    %400 = arith.divf %398, %399 : vector<2x64xf32>
    %401 = vector.extract_strided_slice %400 {offsets = [0, 0], sizes = [2, 32], strides = [1, 1]} : vector<2x64xf32> to vector<2x32xf32>
    %402 = vector.extract_strided_slice %400 {offsets = [0, 32], sizes = [2, 32], strides = [1, 1]} : vector<2x64xf32> to vector<2x32xf32>
    %403 = vector.extract_strided_slice %394 {offsets = [0, 64], sizes = [2, 32], strides = [1, 1]} : vector<2x128xf32> to vector<2x32xf32>
    %404 = vector.extract_strided_slice %394 {offsets = [0, 96], sizes = [2, 32], strides = [1, 1]} : vector<2x128xf32> to vector<2x32xf32>
    %405 = arith.mulf %401, %404 : vector<2x32xf32>
    %406 = arith.addf %403, %405 : vector<2x32xf32>
    %407 = math.tanh %406 : vector<2x32xf32>
    %408 = arith.subf %368, %407 : vector<2x32xf32>
    %409 = arith.mulf %402, %408 : vector<2x32xf32>
    %410 = arith.addf %407, %409 : vector<2x32xf32>
    %cst_127 = arith.constant dense<0.000000e+00> : vector<2x3xf32>
    %411 = tpu.matmul %410, %369, %cst_127 {dimension_numbers = #tpu.dot_dimension_numbers<[1], [0], [0], [1], [0, 0, 1, 1], [], []>} : vector<2x32xf32>, vector<32x3xf32>, vector<2x3xf32> -> vector<2x3xf32>
    %412 = arith.addf %411, %14 : vector<2x3xf32>
    %413 = arith.addf %412, %370 : vector<2x3xf32>
    %c0_128 = arith.constant 0 : index
    %c0_129 = arith.constant 0 : index
    %c0_130 = arith.constant 0 : index
    %414 = vector.load %arg13[%c0_128, %c0_129, %c0_130] : memref<2x4x3xf32, #tpu.memory_space<vmem>>, vector<2x1x3xf32>
    %415 = vector.shape_cast %414 : vector<2x1x3xf32> to vector<2x3xf32>
    %416 = vector.shape_cast %413 : vector<2x3xf32> to vector<2x1x3xf32>
    tpu.vector_store %arg13[%c0_128, %c0_129, %c0_130], %416 {strides = array<i32>} : memref<2x4x3xf32, #tpu.memory_space<vmem>>, vector<2x1x3xf32>,
    %417 = tpu.concatenate %413, %390 in 1 : vector<2x3xf32>, vector<2x32xf32> -> vector<2x35xf32>
    %c0_131 = arith.constant 0 : index
    %c0_132 = arith.constant 0 : index
    %418 = vector.load %arg7[%c0_131, %c0_132] : memref<35x128xf32, #tpu.memory_space<vmem>>, vector<35x128xf32>
    %cst_133 = arith.constant dense<0.000000e+00> : vector<2x128xf32>
    %419 = tpu.matmul %417, %418, %cst_133 {dimension_numbers = #tpu.dot_dimension_numbers<[1], [0], [0], [1], [0, 0, 1, 1], [], []>} : vector<2x35xf32>, vector<35x128xf32>, vector<2x128xf32> -> vector<2x128xf32>
    %420 = arith.addf %419, %8 : vector<2x128xf32>
    %421 = vector.extract_strided_slice %420 {offsets = [0, 0], sizes = [2, 64], strides = [1, 1]} : vector<2x128xf32> to vector<2x64xf32>
    %422 = arith.negf %421 : vector<2x64xf32>
    %423 = math.exp %422 : vector<2x64xf32>
    %cst_134 = arith.constant 1.000000e+00 : f32
    %424 = vector.broadcast %cst_134 : f32 to vector<2x64xf32>
    %425 = arith.addf %424, %423 : vector<2x64xf32>
    %426 = arith.divf %424, %425 : vector<2x64xf32>
    %427 = vector.extract_strided_slice %426 {offsets = [0, 0], sizes = [2, 32], strides = [1, 1]} : vector<2x64xf32> to vector<2x32xf32>
    %428 = vector.extract_strided_slice %426 {offsets = [0, 32], sizes = [2, 32], strides = [1, 1]} : vector<2x64xf32> to vector<2x32xf32>
    %429 = vector.extract_strided_slice %420 {offsets = [0, 64], sizes = [2, 32], strides = [1, 1]} : vector<2x128xf32> to vector<2x32xf32>
    %430 = vector.extract_strided_slice %420 {offsets = [0, 96], sizes = [2, 32], strides = [1, 1]} : vector<2x128xf32> to vector<2x32xf32>
    %431 = arith.mulf %427, %430 : vector<2x32xf32>
    %432 = arith.addf %429, %431 : vector<2x32xf32>
    %433 = math.tanh %432 : vector<2x32xf32>
    %434 = arith.subf %390, %433 : vector<2x32xf32>
    %435 = arith.mulf %428, %434 : vector<2x32xf32>
    %436 = arith.addf %433, %435 : vector<2x32xf32>
    %437 = tpu.concatenate %436, %410 in 1 : vector<2x32xf32>, vector<2x32xf32> -> vector<2x64xf32>
    %c0_135 = arith.constant 0 : index
    %c0_136 = arith.constant 0 : index
    %438 = vector.load %arg9[%c0_135, %c0_136] : memref<64x128xf32, #tpu.memory_space<vmem>>, vector<64x128xf32>
    %cst_137 = arith.constant dense<0.000000e+00> : vector<2x128xf32>
    %439 = tpu.matmul %437, %438, %cst_137 {dimension_numbers = #tpu.dot_dimension_numbers<[1], [0], [0], [1], [0, 0, 1, 1], [], []>} : vector<2x64xf32>, vector<64x128xf32>, vector<2x128xf32> -> vector<2x128xf32>
    %440 = arith.addf %439, %11 : vector<2x128xf32>
    %441 = vector.extract_strided_slice %440 {offsets = [0, 0], sizes = [2, 64], strides = [1, 1]} : vector<2x128xf32> to vector<2x64xf32>
    %442 = arith.negf %441 : vector<2x64xf32>
    %443 = math.exp %442 : vector<2x64xf32>
    %cst_138 = arith.constant 1.000000e+00 : f32
    %444 = vector.broadcast %cst_138 : f32 to vector<2x64xf32>
    %445 = arith.addf %444, %443 : vector<2x64xf32>
    %446 = arith.divf %444, %445 : vector<2x64xf32>
    %447 = vector.extract_strided_slice %446 {offsets = [0, 0], sizes = [2, 32], strides = [1, 1]} : vector<2x64xf32> to vector<2x32xf32>
    %448 = vector.extract_strided_slice %446 {offsets = [0, 32], sizes = [2, 32], strides = [1, 1]} : vector<2x64xf32> to vector<2x32xf32>
    %449 = vector.extract_strided_slice %440 {offsets = [0, 64], sizes = [2, 32], strides = [1, 1]} : vector<2x128xf32> to vector<2x32xf32>
    %450 = vector.extract_strided_slice %440 {offsets = [0, 96], sizes = [2, 32], strides = [1, 1]} : vector<2x128xf32> to vector<2x32xf32>
    %451 = arith.mulf %447, %450 : vector<2x32xf32>
    %452 = arith.addf %449, %451 : vector<2x32xf32>
    %453 = math.tanh %452 : vector<2x32xf32>
    %454 = arith.subf %410, %453 : vector<2x32xf32>
    %455 = arith.mulf %448, %454 : vector<2x32xf32>
    %456 = arith.addf %453, %455 : vector<2x32xf32>
    %cst_139 = arith.constant dense<0.000000e+00> : vector<2x3xf32>
    %457 = tpu.matmul %456, %369, %cst_139 {dimension_numbers = #tpu.dot_dimension_numbers<[1], [0], [0], [1], [0, 0, 1, 1], [], []>} : vector<2x32xf32>, vector<32x3xf32>, vector<2x3xf32> -> vector<2x3xf32>
    %458 = arith.addf %457, %14 : vector<2x3xf32>
    %459 = arith.addf %458, %413 : vector<2x3xf32>
    %c0_140 = arith.constant 0 : index
    %c1_141 = arith.constant 1 : index
    %c0_142 = arith.constant 0 : index
    %460 = vector.load %arg13[%c0_140, %c1_141, %c0_142] : memref<2x4x3xf32, #tpu.memory_space<vmem>>, vector<2x1x3xf32>
    %461 = vector.shape_cast %460 : vector<2x1x3xf32> to vector<2x3xf32>
    %462 = vector.shape_cast %459 : vector<2x3xf32> to vector<2x1x3xf32>
    tpu.vector_store %arg13[%c0_140, %c1_141, %c0_142], %462 {strides = array<i32>} : memref<2x4x3xf32, #tpu.memory_space<vmem>>, vector<2x1x3xf32>,
    %463 = tpu.concatenate %459, %436 in 1 : vector<2x3xf32>, vector<2x32xf32> -> vector<2x35xf32>
    %c0_143 = arith.constant 0 : index
    %c0_144 = arith.constant 0 : index
    %464 = vector.load %arg7[%c0_143, %c0_144] : memref<35x128xf32, #tpu.memory_space<vmem>>, vector<35x128xf32>
    %cst_145 = arith.constant dense<0.000000e+00> : vector<2x128xf32>
    %465 = tpu.matmul %463, %464, %cst_145 {dimension_numbers = #tpu.dot_dimension_numbers<[1], [0], [0], [1], [0, 0, 1, 1], [], []>} : vector<2x35xf32>, vector<35x128xf32>, vector<2x128xf32> -> vector<2x128xf32>
    %466 = arith.addf %465, %8 : vector<2x128xf32>
    %467 = vector.extract_strided_slice %466 {offsets = [0, 0], sizes = [2, 64], strides = [1, 1]} : vector<2x128xf32> to vector<2x64xf32>
    %468 = arith.negf %467 : vector<2x64xf32>
    %469 = math.exp %468 : vector<2x64xf32>
    %cst_146 = arith.constant 1.000000e+00 : f32
    %470 = vector.broadcast %cst_146 : f32 to vector<2x64xf32>
    %471 = arith.addf %470, %469 : vector<2x64xf32>
    %472 = arith.divf %470, %471 : vector<2x64xf32>
    %473 = vector.extract_strided_slice %472 {offsets = [0, 0], sizes = [2, 32], strides = [1, 1]} : vector<2x64xf32> to vector<2x32xf32>
    %474 = vector.extract_strided_slice %472 {offsets = [0, 32], sizes = [2, 32], strides = [1, 1]} : vector<2x64xf32> to vector<2x32xf32>
    %475 = vector.extract_strided_slice %466 {offsets = [0, 64], sizes = [2, 32], strides = [1, 1]} : vector<2x128xf32> to vector<2x32xf32>
    %476 = vector.extract_strided_slice %466 {offsets = [0, 96], sizes = [2, 32], strides = [1, 1]} : vector<2x128xf32> to vector<2x32xf32>
    %477 = arith.mulf %473, %476 : vector<2x32xf32>
    %478 = arith.addf %475, %477 : vector<2x32xf32>
    %479 = math.tanh %478 : vector<2x32xf32>
    %480 = arith.subf %436, %479 : vector<2x32xf32>
    %481 = arith.mulf %474, %480 : vector<2x32xf32>
    %482 = arith.addf %479, %481 : vector<2x32xf32>
    %483 = tpu.concatenate %482, %456 in 1 : vector<2x32xf32>, vector<2x32xf32> -> vector<2x64xf32>
    %c0_147 = arith.constant 0 : index
    %c0_148 = arith.constant 0 : index
    %484 = vector.load %arg9[%c0_147, %c0_148] : memref<64x128xf32, #tpu.memory_space<vmem>>, vector<64x128xf32>
    %cst_149 = arith.constant dense<0.000000e+00> : vector<2x128xf32>
    %485 = tpu.matmul %483, %484, %cst_149 {dimension_numbers = #tpu.dot_dimension_numbers<[1], [0], [0], [1], [0, 0, 1, 1], [], []>} : vector<2x64xf32>, vector<64x128xf32>, vector<2x128xf32> -> vector<2x128xf32>
    %486 = arith.addf %485, %11 : vector<2x128xf32>
    %487 = vector.extract_strided_slice %486 {offsets = [0, 0], sizes = [2, 64], strides = [1, 1]} : vector<2x128xf32> to vector<2x64xf32>
    %488 = arith.negf %487 : vector<2x64xf32>
    %489 = math.exp %488 : vector<2x64xf32>
    %cst_150 = arith.constant 1.000000e+00 : f32
    %490 = vector.broadcast %cst_150 : f32 to vector<2x64xf32>
    %491 = arith.addf %490, %489 : vector<2x64xf32>
    %492 = arith.divf %490, %491 : vector<2x64xf32>
    %493 = vector.extract_strided_slice %492 {offsets = [0, 0], sizes = [2, 32], strides = [1, 1]} : vector<2x64xf32> to vector<2x32xf32>
    %494 = vector.extract_strided_slice %492 {offsets = [0, 32], sizes = [2, 32], strides = [1, 1]} : vector<2x64xf32> to vector<2x32xf32>
    %495 = vector.extract_strided_slice %486 {offsets = [0, 64], sizes = [2, 32], strides = [1, 1]} : vector<2x128xf32> to vector<2x32xf32>
    %496 = vector.extract_strided_slice %486 {offsets = [0, 96], sizes = [2, 32], strides = [1, 1]} : vector<2x128xf32> to vector<2x32xf32>
    %497 = arith.mulf %493, %496 : vector<2x32xf32>
    %498 = arith.addf %495, %497 : vector<2x32xf32>
    %499 = math.tanh %498 : vector<2x32xf32>
    %500 = arith.subf %456, %499 : vector<2x32xf32>
    %501 = arith.mulf %494, %500 : vector<2x32xf32>
    %502 = arith.addf %499, %501 : vector<2x32xf32>
    %cst_151 = arith.constant dense<0.000000e+00> : vector<2x3xf32>
    %503 = tpu.matmul %502, %369, %cst_151 {dimension_numbers = #tpu.dot_dimension_numbers<[1], [0], [0], [1], [0, 0, 1, 1], [], []>} : vector<2x32xf32>, vector<32x3xf32>, vector<2x3xf32> -> vector<2x3xf32>
    %504 = arith.addf %503, %14 : vector<2x3xf32>
    %505 = arith.addf %504, %459 : vector<2x3xf32>
    %c0_152 = arith.constant 0 : index
    %c2_153 = arith.constant 2 : index
    %c0_154 = arith.constant 0 : index
    %506 = vector.load %arg13[%c0_152, %c2_153, %c0_154] : memref<2x4x3xf32, #tpu.memory_space<vmem>>, vector<2x1x3xf32>
    %507 = vector.shape_cast %506 : vector<2x1x3xf32> to vector<2x3xf32>
    %508 = vector.shape_cast %505 : vector<2x3xf32> to vector<2x1x3xf32>
    tpu.vector_store %arg13[%c0_152, %c2_153, %c0_154], %508 {strides = array<i32>} : memref<2x4x3xf32, #tpu.memory_space<vmem>>, vector<2x1x3xf32>,
    %509 = tpu.concatenate %505, %482 in 1 : vector<2x3xf32>, vector<2x32xf32> -> vector<2x35xf32>
    %c0_155 = arith.constant 0 : index
    %c0_156 = arith.constant 0 : index
    %510 = vector.load %arg7[%c0_155, %c0_156] : memref<35x128xf32, #tpu.memory_space<vmem>>, vector<35x128xf32>
    %cst_157 = arith.constant dense<0.000000e+00> : vector<2x128xf32>
    %511 = tpu.matmul %509, %510, %cst_157 {dimension_numbers = #tpu.dot_dimension_numbers<[1], [0], [0], [1], [0, 0, 1, 1], [], []>} : vector<2x35xf32>, vector<35x128xf32>, vector<2x128xf32> -> vector<2x128xf32>
    %512 = arith.addf %511, %8 : vector<2x128xf32>
    %513 = vector.extract_strided_slice %512 {offsets = [0, 0], sizes = [2, 64], strides = [1, 1]} : vector<2x128xf32> to vector<2x64xf32>
    %514 = arith.negf %513 : vector<2x64xf32>
    %515 = math.exp %514 : vector<2x64xf32>
    %cst_158 = arith.constant 1.000000e+00 : f32
    %516 = vector.broadcast %cst_158 : f32 to vector<2x64xf32>
    %517 = arith.addf %516, %515 : vector<2x64xf32>
    %518 = arith.divf %516, %517 : vector<2x64xf32>
    %519 = vector.extract_strided_slice %518 {offsets = [0, 0], sizes = [2, 32], strides = [1, 1]} : vector<2x64xf32> to vector<2x32xf32>
    %520 = vector.extract_strided_slice %518 {offsets = [0, 32], sizes = [2, 32], strides = [1, 1]} : vector<2x64xf32> to vector<2x32xf32>
    %521 = vector.extract_strided_slice %512 {offsets = [0, 64], sizes = [2, 32], strides = [1, 1]} : vector<2x128xf32> to vector<2x32xf32>
    %522 = vector.extract_strided_slice %512 {offsets = [0, 96], sizes = [2, 32], strides = [1, 1]} : vector<2x128xf32> to vector<2x32xf32>
    %523 = arith.mulf %519, %522 : vector<2x32xf32>
    %524 = arith.addf %521, %523 : vector<2x32xf32>
    %525 = math.tanh %524 : vector<2x32xf32>
    %526 = arith.subf %482, %525 : vector<2x32xf32>
    %527 = arith.mulf %520, %526 : vector<2x32xf32>
    %528 = arith.addf %525, %527 : vector<2x32xf32>
    %529 = tpu.concatenate %528, %502 in 1 : vector<2x32xf32>, vector<2x32xf32> -> vector<2x64xf32>
    %c0_159 = arith.constant 0 : index
    %c0_160 = arith.constant 0 : index
    %530 = vector.load %arg9[%c0_159, %c0_160] : memref<64x128xf32, #tpu.memory_space<vmem>>, vector<64x128xf32>
    %cst_161 = arith.constant dense<0.000000e+00> : vector<2x128xf32>
    %531 = tpu.matmul %529, %530, %cst_161 {dimension_numbers = #tpu.dot_dimension_numbers<[1], [0], [0], [1], [0, 0, 1, 1], [], []>} : vector<2x64xf32>, vector<64x128xf32>, vector<2x128xf32> -> vector<2x128xf32>
    %532 = arith.addf %531, %11 : vector<2x128xf32>
    %533 = vector.extract_strided_slice %532 {offsets = [0, 0], sizes = [2, 64], strides = [1, 1]} : vector<2x128xf32> to vector<2x64xf32>
    %534 = arith.negf %533 : vector<2x64xf32>
    %535 = math.exp %534 : vector<2x64xf32>
    %cst_162 = arith.constant 1.000000e+00 : f32
    %536 = vector.broadcast %cst_162 : f32 to vector<2x64xf32>
    %537 = arith.addf %536, %535 : vector<2x64xf32>
    %538 = arith.divf %536, %537 : vector<2x64xf32>
    %539 = vector.extract_strided_slice %538 {offsets = [0, 0], sizes = [2, 32], strides = [1, 1]} : vector<2x64xf32> to vector<2x32xf32>
    %540 = vector.extract_strided_slice %538 {offsets = [0, 32], sizes = [2, 32], strides = [1, 1]} : vector<2x64xf32> to vector<2x32xf32>
    %541 = vector.extract_strided_slice %532 {offsets = [0, 64], sizes = [2, 32], strides = [1, 1]} : vector<2x128xf32> to vector<2x32xf32>
    %542 = vector.extract_strided_slice %532 {offsets = [0, 96], sizes = [2, 32], strides = [1, 1]} : vector<2x128xf32> to vector<2x32xf32>
    %543 = arith.mulf %539, %542 : vector<2x32xf32>
    %544 = arith.addf %541, %543 : vector<2x32xf32>
    %545 = math.tanh %544 : vector<2x32xf32>
    %546 = arith.subf %502, %545 : vector<2x32xf32>
    %547 = arith.mulf %540, %546 : vector<2x32xf32>
    %548 = arith.addf %545, %547 : vector<2x32xf32>
    %cst_163 = arith.constant dense<0.000000e+00> : vector<2x3xf32>
    %549 = tpu.matmul %548, %369, %cst_163 {dimension_numbers = #tpu.dot_dimension_numbers<[1], [0], [0], [1], [0, 0, 1, 1], [], []>} : vector<2x32xf32>, vector<32x3xf32>, vector<2x3xf32> -> vector<2x3xf32>
    %550 = arith.addf %549, %14 : vector<2x3xf32>
    %551 = arith.addf %550, %505 : vector<2x3xf32>
    %c0_164 = arith.constant 0 : index
    %c3_165 = arith.constant 3 : index
    %c0_166 = arith.constant 0 : index
    %552 = vector.load %arg13[%c0_164, %c3_165, %c0_166] : memref<2x4x3xf32, #tpu.memory_space<vmem>>, vector<2x1x3xf32>
    %553 = vector.shape_cast %552 : vector<2x1x3xf32> to vector<2x3xf32>
    %554 = vector.shape_cast %551 : vector<2x3xf32> to vector<2x1x3xf32>
    tpu.vector_store %arg13[%c0_164, %c3_165, %c0_166], %554 {strides = array<i32>} : memref<2x4x3xf32, #tpu.memory_space<vmem>>, vector<2x1x3xf32>,
    return
  }
}

</mosaic_0001>

<bundles_post_ra>
// kernel: seq2seq_forward.1
= control target key start
LH: loop header
LB: loop body
LE: loop exit
PB: predicated region body
PF: predicated region fallthrough
CT: control target
= control target key end

     0   :  { %18 = vsyncpa [#allocation3], 0  ;;  %s5895_s0 = inlined_call_operand.vmem [shape: f32[2,8,4], index: 0, kind: input, shape index: {}]   ;;  %s5896_s1 = inlined_call_operand.vmem [shape: f32[2,3], index: 1, kind: input, shape index: {}]   ;;  %s5897_s2 = inlined_call_operand.vmem [shape: f32[4,128], index: 2, kind: input, shape index: {}]   ;;  %s5898_s3 = inlined_call_operand.hbm [shape: f32[32,128], index: 3, kind: input, shape index: {}]   ;;  %s5899_s4 = inlined_call_operand.vmem [shape: f32[1,128], index: 4, kind: input, shape index: {}]   ;;  %s5900_s5 = inlined_call_operand.vmem [shape: f32[64,128], index: 5, kind: input, shape index: {}]   ;;  %s5901_s6 = inlined_call_operand.vmem [shape: f32[1,128], index: 6, kind: input, shape index: {}]   ;;  %s5902_s7 = inlined_call_operand.hbm [shape: f32[35,128], index: 7, kind: input, shape index: {}]   ;;  %s5903_s8 = inlined_call_operand.vmem [shape: f32[1,128], index: 8, kind: input, shape index: {}]   ;;  %s5904_s9 = inlined_call_operand.hbm [shape: f32[64,128], index: 9, kind: input, shape index: {}]   ;;  %s5905_s10 = inlined_call_operand.vmem [shape: f32[1,128], index: 10, kind: input, shape index: {}]   ;;  %s5906_s11 = inlined_call_operand.vmem [shape: f32[32,3], index: 11, kind: input, shape index: {}]   ;;  %s5907_s12 = inlined_call_operand.vmem [shape: f32[1,3], index: 12, kind: input, shape index: {}]   ;;  %s5908_s13 = inlined_call_operand.vmem [shape: f32[2,4,3], index: 13, kind: output, shape index: {}]  }
   0x1   :  { %19 = vsyncpa [#allocation5], 0  ;;  %s5026_s25 = smov [#allocation4]   ;;  %s5027_s27 = smov [#allocation2]  }
   0x2   :  { %s49_s26 = sshll.u32 %s5026_s25, 4  ;;  %s31_s28 = sshll.u32 %s5027_s27, 4  ;;  %s50_s26 = int_to_ptr.vmem [resolvable:$true] %s49_s26  ;;  %s5109_s28 = int_to_ptr.vmem [resolvable:$true] %s31_s28 }
   0x3   :  { %s4956_s14 = scalar_lea.hbm %s5902_s7, 640 }
   0x4   :  { %p4957_p0 = scmp.ne.s32.totalorder %s5902_s7, %s4956_s14  ;;  %p4960_p1 = scmp.lt.u32.totalorder %s4956_s14, %s5902_s7 }
   0x6   :  { %p4962_p2 = pnand %p4960_p1, %p4957_p0 }
   0x8   :  { %4965 = shalt.err (!%p4962_p2)
}
   0x9   :  { %s4966_s19 = scalar_lea.vmem %s50_s26, 640  ;;  %p4971_p4 = scmp.lt.s32.totalorder %s50_s26, %s50_s26 }
   0xa   :  { %p4967_p3 = scmp.ne.s32.totalorder %s50_s26, %s4966_s19  ;;  %p4972_p5 = scmp.lt.s32.totalorder %s4966_s19, %s4966_s19 }
   0xc   :  { %p4973_p6 = por %p4972_p5, %p4971_p4 }
   0xe   :  { %p4974_p7 = pnand %p4973_p6, %p4967_p3 }
  0x10   :  { %4977 = shalt.err (!%p4974_p7)
}
  0x11   :  { %s5028_s20 = smov 128   ;;  %s5029_s21 = smov 8  }
  0x12   :  { %55 = dma.hbm_to_vmem [thread:$0]  %s5902_s7, 640, %s50_s26, [#allocation5], %s5028_s20, %s5028_s20, %s5029_s21  }
  0x13   :  { %s4978_s27 = scalar_lea.hbm %s5898_s3, 512 }
  0x14   :  { %p4979_p8 = scmp.ne.s32.totalorder %s5898_s3, %s4978_s27  ;;  %p4982_p9 = scmp.lt.u32.totalorder %s4978_s27, %s5898_s3 }
  0x16   :  { %p4984_p10 = pnand %p4982_p9, %p4979_p8 }
  0x18   :  { %4987 = shalt.err (!%p4984_p10)
}
  0x19   :  { %s4988_s16 = scalar_lea.vmem %s5109_s28, 512  ;;  %p4993_p12 = scmp.lt.s32.totalorder %s5109_s28, %s5109_s28 }
  0x1a   :  { %p4989_p11 = scmp.ne.s32.totalorder %s5109_s28, %s4988_s16  ;;  %p4994_p13 = scmp.lt.s32.totalorder %s4988_s16, %s4988_s16 }
  0x1c   :  { %p4995_p0 = por %p4994_p13, %p4993_p12 }
  0x1e   :  { %p4996_p1 = pnand %p4995_p0, %p4989_p11 }
  0x20   :  { %4999 = shalt.err (!%p4996_p1)
}
  0x21   :  { %37 = dma.hbm_to_vmem [thread:$0]  %s5898_s3, 512, %s5109_s28, [#allocation3], %s5028_s20, %s5028_s20, %s5029_s21  }
  0x22   :  { %s5030_s17 = smov [#allocation6]   ;;  %s5000_s23 = scalar_lea.hbm %s5904_s9, 1024 }
  0x23   :  { %s63_s18 = sshll.u32 %s5030_s17, 4  ;;  %p5001_p2 = scmp.ne.s32.totalorder %s5904_s9, %s5000_s23  ;;  %s64_s18 = int_to_ptr.vmem [resolvable:$true] %s63_s18 }
  0x24   :  { %p5004_p3 = scmp.lt.u32.totalorder %s5000_s23, %s5904_s9 }
  0x26   :  { %p5006_p4 = pnand %p5004_p3, %p5001_p2 }
  0x28   :  { %5009 = shalt.err (!%p5006_p4)
}
  0x29   :  { %s5010_s30 = scalar_lea.vmem %s64_s18, 1024  ;;  %p5015_p6 = scmp.lt.s32.totalorder %s64_s18, %s64_s18 }
  0x2a   :  { %p5011_p5 = scmp.ne.s32.totalorder %s64_s18, %s5010_s30  ;;  %p5016_p7 = scmp.lt.s32.totalorder %s5010_s30, %s5010_s30 }
  0x2c   :  { %p5017_p8 = por %p5016_p7, %p5015_p6 }
  0x2e   :  { %p5018_p9 = pnand %p5017_p8, %p5011_p5 }
  0x30   :  { %5021 = shalt.err (!%p5018_p9)
}
  0x31   :  { %69 = dma.hbm_to_vmem [thread:$0]  %s5904_s9, 1024, %s64_s18, [#allocation5], %s5028_s20, %s5028_s20, %s5029_s21  }
  0x32   :  { %5022 = dma.done.wait [#allocation3], 512  }
  0x33   :  { %5023 = vsyncadd [#allocation3], 4294966784 }
  0x34   :  { %5024 = dma.done.wait [#allocation5], 1664  }
  0x35   :  { %5025 = vsyncadd [#allocation5], 4294965632  ;;  %v5031_v0 = vmov 0.0   ;;  %vm5032_vm0 = vmmov 0   ;;  %vm131_vm1 = vcmask 1043456   ;;  %vm126_vm2 = vcmask 1041409  }
  0x36   :  { %4082 = vmatprep.subr.mxu0 %v5031_v0  ;;  %4084 = vmatprep.mubr.msk.f32.mxu0 %vm5032_vm0, %v5031_v0  ;;  %v5170_v1 = vld [vmem:[%s5897_s2] sm:$0xf]  ;;  %v121_v3 = vld [vmem:[%s5895_s0 + $0x8] sm:$0x1]  ;;  %vm128_vm3 = vcmask 31744   ;;  %v5033_v21 = vmov 0.0|0.0  }
  0x37   :  { %4087 = vmatprep.subr.mxu1 %v5031_v0  ;;  %4089 = vmatprep.mubr.msk.f32.mxu1 %vm5032_vm0, %v5031_v0  ;;  %v120_v2 = vld [vmem:[%s5895_s0] sm:$0x1]  ;;  %v125_v4 = vrot.slane %v121_v3, 7  ;;  %v284_v5 = vld [vmem:[%s5895_s0 + $0xa] sm:$0x1]  ;;  %v753_v22 = vld [vmem:[#allocation2 + $0x10] sm:$0xff] }
  0x38   :  { %4083 = vmatpush3.msk.msra.mxu0 %vm131_vm1, %v5170_v1  ;;  %4088 = vmatpush3.msk.msra.mxu1 %vm131_vm1, %v5170_v1  ;;  %v283_v6 = vld [vmem:[%s5895_s0 + $0x2] sm:$0x1]  ;;  %v287_v7 = vrot.slane %v284_v5, 7  ;;  %v440_v8 = vld [vmem:[%s5895_s0 + $0xc] sm:$0x1]  ;;  %v754_v23 = vld [vmem:[#allocation2 + $0x18] sm:$0xff] }
  0x39   :  { %4092 = vmatprep.subr.mxu0 %v5031_v0  ;;  %4097 = vmatprep.subr.mxu1 %v5031_v0  ;;  %v127_v9 = vsel %vm126_vm2, %v125_v4, %v120_v2  ;;  %v443_v11 = vrot.slane %v440_v8, 7  ;;  %v439_v12 = vld [vmem:[%s5895_s0 + $0x4] sm:$0x1]  ;;  %v596_v13 = vld [vmem:[%s5895_s0 + $0xe] sm:$0x1]  ;;  %v5228_v24 = vpack.c.bf16 %v754_v23, %v753_v22  ;;  %s5034_s28 = smov 32  }
  0x3a   :  { %4085 = vmatmul.mubr.msk.f32.vlgmr.msra.gmra.mrb[0].mxu0 %vm128_vm3, %v127_v9  ;;  %v288_v10 = vsel %vm126_vm2, %v287_v7, %v283_v6  ;;  %v599_v15 = vrot.slane %v596_v13, 7  ;;  %v595_v16 = vld [vmem:[%s5895_s0 + $0x6] sm:$0x1]  ;;  %v752_v18 = vld [vmem:[#allocation2 + $0x8] sm:$0xff]  ;;  %v5241_v25 = vld [vmem:[%s5899_s4] ss:$0 sm:$0xff] }
  0x3b   :  { %4093 = vmatpush3.msk.msra.mxu0 %vm131_vm1, %v5170_v1  ;;  %4094 = vmatprep.mubr.msk.f32.mxu0 %vm5032_vm0, %v5031_v0  ;;  %v444_v14 = vsel %vm126_vm2, %v443_v11, %v439_v12  ;;  %v751_v17 = vld [vmem:[#allocation2] sm:$0xff]  ;;  %s5035_s14 = smov 64   ;;  %s5036_s9 = smov 96   ;;  %v206_v40 = vld [vmem:[%s5895_s0 + $0x9] sm:$0x1]  ;;  %v865_v52 = vld [vmem:[%s5900_s5 + $0x10] sm:$0xff] }
  0x3c   :  { %4102 = vmatprep.subr.mxu0 %v5031_v0  ;;  %v600_v19 = vsel %vm126_vm2, %v599_v15, %v595_v16  ;;  %v5223_v20 = vpack.c.bf16 %v752_v18, %v751_v17  ;;  %v205_v39 = vld [vmem:[%s5895_s0 + $0x1] sm:$0x1]  ;;  %v209_v41 = vrot.slane %v206_v40, 7  ;;  %v362_v42 = vld [vmem:[%s5895_s0 + $0xb] sm:$0x1]  ;;  %v866_v53 = vld [vmem:[%s5900_s5 + $0x18] sm:$0xff] }
  0x3d   :  { %v863_v43 = vld [vmem:[%s5900_s5] sm:$0xff]  ;;  %v365_v45 = vrot.slane %v362_v42, 7  ;;  %v518_v46 = vld [vmem:[%s5895_s0 + $0xd] sm:$0x1]  ;;  %v674_v55 = vld [vmem:[%s5895_s0 + $0xf] sm:$0x1]  ;;  %v5296_v57 = vpack.c.bf16 %v866_v53, %v865_v52 }
  0x3e   :  { %4095 = vmatmul.mubr.msk.f32.vlgmr.msra.gmra.mrb[2].mxu0 %vm128_vm3, %v288_v10  ;;  %v361_v44 = vld [vmem:[%s5895_s0 + $0x3] sm:$0x1]  ;;  %v864_v47 = vld [vmem:[%s5900_s5 + $0x8] sm:$0xff]  ;;  %v210_v48 = vsel %vm126_vm2, %v209_v41, %v205_v39  ;;  %v521_v51 = vrot.slane %v518_v46, 7  ;;  %v517_v54 = vld [vmem:[%s5895_s0 + $0x5] sm:$0x1] }
  0x3f   :  { %4103 = vmatpush3.msk.msra.mxu0 %vm131_vm1, %v5170_v1  ;;  %4104 = vmatprep.mubr.msk.f32.mxu0 %vm5032_vm0, %v5031_v0  ;;  %v5273_v49 = vpack.c.bf16 %v864_v47, %v863_v43  ;;  %v366_v50 = vsel %vm126_vm2, %v365_v45, %v361_v44  ;;  %v677_v60 = vrot.slane %v674_v55, 7  ;;  %v867_v61 = vld [vmem:[%s5900_s5 + $0x20] sm:$0xff]  ;;  %v868_v62 = vld [vmem:[%s5900_s5 + $0x28] sm:$0xff]  ;;  %v869_v4 = vld [vmem:[%s5900_s5 + $0x30] sm:$0xff]  ;;  %vm755_vm4 = vcmask 261120  }
  0x40   :  { %4112 = vmatprep.subr.mxu0 %v5031_v0  ;;  %4090 = vmatmul.mubr.msk.f32.vlgmr.msra.gmra.mrb[0].mxu1 %vm128_vm3, %v210_v48  ;;  %v522_v59 = vsel %vm126_vm2, %v521_v51, %v517_v54  ;;  %v673_v63 = vld [vmem:[%s5895_s0 + $0x7] sm:$0x1]  ;;  %v5317_v2 = vpack.c.bf16 %v868_v62, %v867_v61  ;;  %v870_v5 = vld [vmem:[%s5900_s5 + $0x38] sm:$0xff]  ;;  %vm871_vm5 = vcmask 523264   ;;  %v5372_v10 = vld [vmem:[%s5901_s6] ss:$0 sm:$0xff] }
  0x41   :  { %4098 = vmatpush3.msk.msra.mxu1 %vm131_vm1, %v5170_v1  ;;  %4099 = vmatprep.mubr.msk.f32.mxu1 %vm5032_vm0, %v5031_v0  ;;  %v678_v3 = vsel %vm126_vm2, %v677_v60, %v673_v63  ;;  %vm2458_vm6 = vcmask 23552   ;;  %vm2469_vm7 = vcmask 1042432   ;;  %vm2465_vm8 = vcmask 285696  }
  0x42   :  { %4105 = vmatmul.mubr.msk.f32.vlgmr.msra.gmra.mrb[4].mxu0 %vm128_vm3, %v444_v14  ;;  %4107 = vmatprep.subr.mxu1 %v5031_v0  ;;  %vm2790_vm9 = vcmask 16384  }
  0x43   :  { %4113 = vmatpush3.msk.msra.mxu0 %vm131_vm1, %v5170_v1  ;;  %4114 = vmatprep.mubr.msk.f32.mxu0 %vm5032_vm0, %v5031_v0 }
  0x44   :  { %4534 = vmatprep.subr.bf16.mxu0 %v5033_v21  ;;  %4100 = vmatmul.mubr.msk.f32.vlgmr.msra.gmra.mrb[2].mxu1 %vm128_vm3, %v366_v50 }
  0x45   :  { %4108 = vmatpush3.msk.msra.mxu1 %vm131_vm1, %v5170_v1  ;;  %4109 = vmatprep.mubr.msk.f32.mxu1 %vm5032_vm0, %v5031_v0 }
  0x46   :  { %4115 = vmatmul.mubr.msk.f32.vlgmr.msra.gmra.mrb[6].mxu0 %vm128_vm3, %v600_v19  ;;  %4117 = vmatprep.subr.mxu1 %v5031_v0 }
  0x47   :  { %4536 = vmatpush3.bf16.msra.mxu0 %v5223_v20  ;;  %4130 = vmatprep.mubr.msk.f32.mxu0 %vm5032_vm0, %v5031_v0 }
  0x48   :  { %4537 = vmatprep.subr.bf16.mxu0 %v5033_v21  ;;  %4110 = vmatmul.mubr.msk.f32.vlgmr.msra.gmra.mrb[4].mxu1 %vm128_vm3, %v522_v59 }
  0x49   :  { %4118 = vmatpush3.msk.msra.mxu1 %vm131_vm1, %v5170_v1  ;;  %4119 = vmatprep.mubr.msk.f32.mxu1 %vm5032_vm0, %v5031_v0  ;;  %v5334_v1 = vpack.c.bf16 %v870_v5, %v869_v4 }
  0x4a   :  { %4540 = vmatprep.subr.bf16.mxu1 %v5033_v21 }
  0x4b   :  { %4539 = vmatpush3.bf16.msra.mxu0 %v5228_v24 }
  0x4c   :  { %4558 = vmatprep.subr.bf16.mxu0 %v5033_v21  ;;  %4120 = vmatmul.mubr.msk.f32.vlgmr.msra.gmra.mrb[6].mxu1 %vm128_vm3, %v678_v3 }
  0x4d   :  { %4542 = vmatpush3.bf16.msra.mxu1 %v5273_v49  ;;  %4149 = vmatprep.mubr.msk.f32.mxu1 %vm5032_vm0, %v5031_v0 }
  0x4e   :  { %4131 = vmatmul.mubr.f32.vlgmr.msra.gmra.mrb[0].mxu0 %v5031_v0  ;;  %4543 = vmatprep.subr.bf16.mxu1 %v5033_v21 }
  0x4f   :  { %4179 = vmatprep.mubr.msk.f32.mxu0 %vm5032_vm0, %v5031_v0  ;;  %4560 = vmatpush3.bf16.msra.mxu0 %v5273_v49 }
  0x50   :  { %4561 = vmatprep.subr.bf16.mxu0 %v5033_v21 }
  0x51   :  { %4545 = vmatpush3.bf16.msra.mxu1 %v5296_v57 }
  0x52   :  { %4546 = vmatprep.subr.bf16.mxu1 %v5033_v21 }
  0x53   :  { %4563 = vmatpush3.bf16.msra.mxu0 %v5296_v57 }
  0x54   :  { %4564 = vmatprep.subr.bf16.mxu0 %v5033_v21 }
  0x55   :  { %4548 = vmatpush3.bf16.msra.mxu1 %v5317_v2 }
  0x56   :  { %4549 = vmatprep.subr.bf16.mxu1 %v5033_v21 }
  0x57   :  { %4566 = vmatpush3.bf16.msra.mxu0 %v5317_v2 }
  0x58   :  { %4567 = vmatprep.subr.bf16.mxu0 %v5033_v21 }
  0x59   :  { %4551 = vmatpush3.bf16.msra.mxu1 %v5334_v1 }
  0x5a   :  { %4552 = vmatprep.subr.bf16.mxu1 %v5033_v21 }
  0x5b   :  { %4569 = vmatpush3.bf16.msra.mxu0 %v5334_v1 }
  0x5c   :  { %4570 = vmatprep.subr.bf16.mxu0 %v5033_v21 }
 0x121   :  { %v825_v26 = vpop.f32.mrb[0].mxu0 }
 0x122   :  { %v4774_v27 = vadd.f32 %v5241_v25, %v825_v26  ;;  %v4132_v28 = vpop.f32.mrb[1].mxu0 }
 0x124   :  { %837 = vrot.lane.b32.xlu0 %v4774_v27, %s5034_s28  ;;  %v3819_v29 = vmul.f32 -1.442695, %v4774_v27 }
 0x126   :  { %4811 = vpow2.f32 %v3819_v29 }
 0x130   :  { %v4812_v30 = vpop.eup %4811 }
 0x131   :  { %v833_v31 = vadd.f32 1.0, %v4812_v30 }
 0x133   :  { %4813 = vrcp.f32 %v833_v31 }
 0x13d   :  { %v4814_v32 = vpop.eup %4813 }
 0x196   :  { %v838_v33 = vpop.permute.xlu0 %837 }
 0x197   :  { %v840_v34 = vmul.f32 %v4814_v32, %v838_v33 }
 0x199   :  { %842 = vrot.lane.b32.xlu0 %v840_v34, %s5035_s14 }
 0x20b   :  { %v843_v35 = vpop.permute.xlu0 %842 }
 0x20c   :  { %v845_v36 = vadd.f32 %v4774_v27, %v843_v35 }
 0x20e   :  { %4815 = vtanh.f32 %v845_v36 }
 0x218   :  { %v5246_v37 = vpop.eup %4815 }
 0x219   :  { %v847_v38 = vsub.f32 0.0, %v5246_v37 }
 0x21b   :  { %849 = vrot.lane.b32.xlu1 %v847_v38, %s5036_s9 }
 0x28d   :  { %v850_v56 = vpop.permute.xlu1 %849 }
 0x28e   :  { %v852_v58 = vmul.f32 %v4814_v32, %v850_v56 }
 0x290   :  { %854 = vrot.lane.b32.xlu1 %v852_v58, %s5034_s28 }
 0x302   :  { %v855_v6 = vpop.permute.xlu1 %854 }
 0x303   :  { %v857_v7 = vadd.f32 %v5246_v37, %v855_v6 }
 0x305   :  { %859 = vrot.lane.b32.xlu0 %v857_v7, %s5035_s14 }
 0x377   :  { %v860_v8 = vpop.permute.xlu0 %859 }
 0x378   :  { %v862_v9 = vsel %vm755_vm4, %v860_v8, 0.0 }
 0x379   :  { %4150 = vmatmul.mubr.msk.f32.vlgmr.msra.gmra.mrb[8].mxu1 %vm871_vm5, %v862_v9 }
 0x37a   :  { %4554 = vmatpush3.bf16.msra.mxu1 %v5223_v20  ;;  %4160 = vmatprep.mubr.msk.f32.mxu1 %vm5032_vm0, %v5031_v0 }
 0x37b   :  { %4555 = vmatprep.subr.bf16.mxu1 %v5033_v21 }
 0x37e   :  { %4557 = vmatpush3.bf16.msra.mxu1 %v5228_v24 }
 0x37f   :  { %4576 = vmatprep.subr.bf16.mxu1 %v5033_v21 }
 0x381   :  { %4161 = vmatmul.mubr.msk.f32.vlgmr.msra.gmra.mrb[0].mxu1 %vm755_vm4, %v860_v8 }
 0x382   :  { %4578 = vmatpush3.bf16.msra.mxu1 %v5273_v49  ;;  %4209 = vmatprep.mubr.msk.f32.mxu1 %vm5032_vm0, %v5031_v0 }
 0x383   :  { %4579 = vmatprep.subr.bf16.mxu1 %v5033_v21 }
 0x386   :  { %4581 = vmatpush3.bf16.msra.mxu1 %v5296_v57 }
 0x387   :  { %4582 = vmatprep.subr.bf16.mxu1 %v5033_v21 }
 0x38a   :  { %4584 = vmatpush3.bf16.msra.mxu1 %v5317_v2 }
 0x38b   :  { %4585 = vmatprep.subr.bf16.mxu1 %v5033_v21 }
 0x38e   :  { %4587 = vmatpush3.bf16.msra.mxu1 %v5334_v1 }
 0x38f   :  { %4588 = vmatprep.subr.bf16.mxu1 %v5033_v21 }
 0x44c   :  { %v941_v11 = vpop.f32.mrb[8].mxu1 }
 0x44d   :  { %v942_v12 = vadd.f32 %v5372_v10, %v941_v11  ;;  %v4151_v13 = vpop.f32.mrb[9].mxu1 }
 0x44f   :  { %952 = vrot.lane.b32.xlu1 %v942_v12, %s5034_s28  ;;  %v3821_v17 = vmul.f32 -1.442695, %v942_v12 }
 0x451   :  { %4817 = vpow2.f32 %v3821_v17 }
 0x454   :  { %v1041_v14 = vpop.f32.mrb[0].mxu1 }
 0x455   :  { %v4775_v15 = vadd.f32 %v5241_v25, %v1041_v14  ;;  %v4162_v16 = vpop.f32.mrb[1].mxu1 }
 0x457   :  { %1053 = vrot.lane.b32.xlu0 %v4775_v15, %s5034_s28  ;;  %v3823_v18 = vmul.f32 -1.442695, %v4775_v15 }
 0x459   :  { %4819 = vpow2.f32 %v3823_v18 }
 0x45b   :  { %v4818_v19 = vpop.eup %4817 }
 0x45c   :  { %v948_v22 = vadd.f32 1.0, %v4818_v19 }
 0x45e   :  { %4821 = vrcp.f32 %v948_v22 }
 0x463   :  { %v4820_v23 = vpop.eup %4819 }
 0x464   :  { %v1049_v26 = vadd.f32 1.0, %v4820_v23 }
 0x466   :  { %4823 = vrcp.f32 %v1049_v26 }
 0x468   :  { %v4822_v27 = vpop.eup %4821 }
 0x470   :  { %v4824_v30 = vpop.eup %4823 }
 0x4c1   :  { %v953_v28 = vpop.permute.xlu1 %952 }
 0x4c2   :  { %v955_v29 = vmul.f32 %v4822_v27, %v953_v28 }
 0x4c4   :  { %957 = vrot.lane.b32.xlu1 %v955_v29, %s5035_s14 }
 0x4c9   :  { %v1054_v31 = vpop.permute.xlu0 %1053 }
 0x4ca   :  { %v1056_v32 = vmul.f32 %v4824_v30, %v1054_v31 }
 0x4cc   :  { %1058 = vrot.lane.b32.xlu0 %v1056_v32, %s5035_s14 }
 0x536   :  { %v958_v33 = vpop.permute.xlu1 %957 }
 0x537   :  { %v960_v34 = vadd.f32 %v958_v33, %v942_v12 }
 0x539   :  { %4825 = vtanh.f32 %v960_v34 }
 0x53e   :  { %v1059_v35 = vpop.permute.xlu0 %1058 }
 0x53f   :  { %v1061_v36 = vadd.f32 %v4775_v15, %v1059_v35 }
 0x541   :  { %4827 = vtanh.f32 %v1061_v36 }
 0x543   :  { %v4826_v37 = vpop.eup %4825 }
 0x544   :  { %v962_v38 = vsub.f32 0.0, %v4826_v37 }
 0x546   :  { %964 = vrot.lane.b32.xlu1 %v962_v38, %s5036_s9 }
 0x54b   :  { %v4828_v39 = vpop.eup %4827 }
 0x54c   :  { %v1063_v40 = vsub.f32 %v857_v7, %v4828_v39 }
 0x54e   :  { %1065 = vrot.lane.b32.xlu0 %v1063_v40, %s5036_s9 }
 0x5b8   :  { %v965_v41 = vpop.permute.xlu1 %964 }
 0x5b9   :  { %v967_v42 = vmul.f32 %v4822_v27, %v965_v41 }
 0x5bb   :  { %969 = vrot.lane.b32.xlu1 %v967_v42, %s5034_s28 }
 0x5c0   :  { %v1066_v43 = vpop.permute.xlu0 %1065 }
 0x5c1   :  { %v1068_v44 = vmul.f32 %v4824_v30, %v1066_v43 }
 0x5c3   :  { %1070 = vrot.lane.b32.xlu0 %v1068_v44, %s5034_s28 }
 0x62d   :  { %v970_v45 = vpop.permute.xlu1 %969 }
 0x62e   :  { %v972_v46 = vadd.f32 %v4826_v37, %v970_v45 }
 0x630   :  { %1079 = vrot.lane.b32.xlu0 %v972_v46, %s5036_s9 }
 0x635   :  { %v1071_v47 = vpop.permute.xlu0 %1070 }
 0x636   :  { %v1073_v48 = vadd.f32 %v4828_v39, %v1071_v47 }
 0x638   :  { %1075 = vrot.lane.b32.xlu1 %v1073_v48, %s5035_s14 }
 0x6a2   :  { %v1080_v50 = vpop.permute.xlu0 %1079 }
 0x6aa   :  { %v1076_v51 = vpop.permute.xlu1 %1075 }
 0x6ab   :  { %v1082_v52 = vsel %vm755_vm4, %v1076_v51, %v1080_v50 }
 0x6ac   :  { %4180 = vmatmul.mubr.msk.f32.vlgmr.msra.gmra.mrb[8].mxu0 %vm871_vm5, %v1082_v52 }
 0x6ad   :  { %4572 = vmatpush3.bf16.msra.mxu0 %v5223_v20  ;;  %4190 = vmatprep.mubr.msk.f32.mxu0 %vm5032_vm0, %v5031_v0 }
 0x6ae   :  { %4573 = vmatprep.subr.bf16.mxu0 %v5033_v21 }
 0x6b1   :  { %4575 = vmatpush3.bf16.msra.mxu0 %v5228_v24 }
 0x6b2   :  { %4594 = vmatprep.subr.bf16.mxu0 %v5033_v21 }
 0x6b4   :  { %4191 = vmatmul.mubr.msk.f32.vlgmr.msra.gmra.mrb[2].mxu0 %vm755_vm4, %v1076_v51 }
 0x6b5   :  { %4596 = vmatpush3.bf16.msra.mxu0 %v5273_v49  ;;  %4239 = vmatprep.mubr.msk.f32.mxu0 %vm5032_vm0, %v5031_v0 }
 0x6b6   :  { %4597 = vmatprep.subr.bf16.mxu0 %v5033_v21 }
 0x6b9   :  { %4599 = vmatpush3.bf16.msra.mxu0 %v5296_v57 }
 0x6ba   :  { %4600 = vmatprep.subr.bf16.mxu0 %v5033_v21 }
 0x6bd   :  { %4602 = vmatpush3.bf16.msra.mxu0 %v5317_v2 }
 0x6be   :  { %4603 = vmatprep.subr.bf16.mxu0 %v5033_v21 }
 0x6c1   :  { %4605 = vmatpush3.bf16.msra.mxu0 %v5334_v1 }
 0x6c2   :  { %4606 = vmatprep.subr.bf16.mxu0 %v5033_v21 }
 0x77f   :  { %v1152_v53 = vpop.f32.mrb[8].mxu0 }
 0x780   :  { %v1153_v54 = vadd.f32 %v5372_v10, %v1152_v53  ;;  %v4181_v55 = vpop.f32.mrb[9].mxu0 }
 0x782   :  { %1163 = vrot.lane.b32.xlu1 %v1153_v54, %s5034_s28  ;;  %v3825_v60 = vmul.f32 -1.442695, %v1153_v54 }
 0x784   :  { %4829 = vpow2.f32 %v3825_v60 }
 0x787   :  { %v1252_v56 = vpop.f32.mrb[2].mxu0 }
 0x788   :  { %v4776_v58 = vadd.f32 %v5241_v25, %v1252_v56  ;;  %v4192_v59 = vpop.f32.mrb[3].mxu0 }
 0x78a   :  { %1264 = vrot.lane.b32.xlu0 %v4776_v58, %s5034_s28  ;;  %v3827_v61 = vmul.f32 -1.442695, %v4776_v58 }
 0x78c   :  { %4831 = vpow2.f32 %v3827_v61 }
 0x78e   :  { %v4830_v62 = vpop.eup %4829 }
 0x78f   :  { %v1159_v63 = vadd.f32 1.0, %v4830_v62 }
 0x791   :  { %4833 = vrcp.f32 %v1159_v63 }
 0x796   :  { %v4832_v3 = vpop.eup %4831 }
 0x797   :  { %v1260_v4 = vadd.f32 1.0, %v4832_v3 }
 0x799   :  { %4835 = vrcp.f32 %v1260_v4 }
 0x79b   :  { %v4834_v5 = vpop.eup %4833 }
 0x7a3   :  { %v4836_v8 = vpop.eup %4835 }
 0x7f4   :  { %v1164_v6 = vpop.permute.xlu1 %1163 }
 0x7f5   :  { %v1166_v7 = vmul.f32 %v4834_v5, %v1164_v6 }
 0x7f7   :  { %1168 = vrot.lane.b32.xlu1 %v1166_v7, %s5035_s14 }
 0x7fc   :  { %v1265_v9 = vpop.permute.xlu0 %1264 }
 0x7fd   :  { %v1267_v11 = vmul.f32 %v4836_v8, %v1265_v9 }
 0x7ff   :  { %1269 = vrot.lane.b32.xlu0 %v1267_v11, %s5035_s14 }
 0x869   :  { %v1169_v12 = vpop.permute.xlu1 %1168 }
 0x86a   :  { %v1171_v13 = vadd.f32 %v1169_v12, %v1153_v54 }
 0x86c   :  { %4837 = vtanh.f32 %v1171_v13 }
 0x871   :  { %v1270_v14 = vpop.permute.xlu0 %1269 }
 0x872   :  { %v1272_v15 = vadd.f32 %v4776_v58, %v1270_v14 }
 0x874   :  { %4839 = vtanh.f32 %v1272_v15 }
 0x876   :  { %v4838_v16 = vpop.eup %4837 }
 0x877   :  { %v1173_v17 = vsub.f32 %v972_v46, %v4838_v16 }
 0x879   :  { %1175 = vrot.lane.b32.xlu1 %v1173_v17, %s5036_s9 }
 0x87e   :  { %v4840_v18 = vpop.eup %4839 }
 0x87f   :  { %v1274_v19 = vsub.f32 %v1073_v48, %v4840_v18 }
 0x881   :  { %1276 = vrot.lane.b32.xlu0 %v1274_v19, %s5036_s9 }
 0x8eb   :  { %v1176_v22 = vpop.permute.xlu1 %1175 }
 0x8ec   :  { %v1178_v23 = vmul.f32 %v4834_v5, %v1176_v22 }
 0x8ee   :  { %1180 = vrot.lane.b32.xlu1 %v1178_v23, %s5034_s28 }
 0x8f3   :  { %v1277_v26 = vpop.permute.xlu0 %1276 }
 0x8f4   :  { %v1279_v27 = vmul.f32 %v4836_v8, %v1277_v26 }
 0x8f6   :  { %1281 = vrot.lane.b32.xlu0 %v1279_v27, %s5034_s28 }
 0x960   :  { %v1181_v28 = vpop.permute.xlu1 %1180 }
 0x961   :  { %v1183_v29 = vadd.f32 %v4838_v16, %v1181_v28 }
 0x963   :  { %1290 = vrot.lane.b32.xlu0 %v1183_v29, %s5036_s9 }
 0x968   :  { %v1282_v30 = vpop.permute.xlu0 %1281 }
 0x969   :  { %v1284_v31 = vadd.f32 %v4840_v18, %v1282_v30 }
 0x96b   :  { %1286 = vrot.lane.b32.xlu1 %v1284_v31, %s5035_s14 }
 0x9d5   :  { %v1291_v32 = vpop.permute.xlu0 %1290 }
 0x9dd   :  { %v1287_v33 = vpop.permute.xlu1 %1286 }
 0x9de   :  { %v1293_v34 = vsel %vm755_vm4, %v1287_v33, %v1291_v32 }
 0x9df   :  { %4210 = vmatmul.mubr.msk.f32.vlgmr.msra.gmra.mrb[10].mxu1 %vm871_vm5, %v1293_v34 }
 0x9e0   :  { %4590 = vmatpush3.bf16.msra.mxu1 %v5223_v20  ;;  %4220 = vmatprep.mubr.msk.f32.mxu1 %vm5032_vm0, %v5031_v0 }
 0x9e1   :  { %4591 = vmatprep.subr.bf16.mxu1 %v5033_v21 }
 0x9e4   :  { %4593 = vmatpush3.bf16.msra.mxu1 %v5228_v24 }
 0x9e5   :  { %4612 = vmatprep.subr.bf16.mxu1 %v5033_v21 }
 0x9e7   :  { %4221 = vmatmul.mubr.msk.f32.vlgmr.msra.gmra.mrb[2].mxu1 %vm755_vm4, %v1287_v33 }
 0x9e8   :  { %4614 = vmatpush3.bf16.msra.mxu1 %v5273_v49  ;;  %4269 = vmatprep.mubr.msk.f32.mxu1 %vm5032_vm0, %v5031_v0 }
 0x9e9   :  { %4615 = vmatprep.subr.bf16.mxu1 %v5033_v21 }
 0x9ec   :  { %4617 = vmatpush3.bf16.msra.mxu1 %v5296_v57 }
 0x9ed   :  { %4618 = vmatprep.subr.bf16.mxu1 %v5033_v21 }
 0x9f0   :  { %4620 = vmatpush3.bf16.msra.mxu1 %v5317_v2 }
 0x9f1   :  { %4621 = vmatprep.subr.bf16.mxu1 %v5033_v21 }
 0x9f4   :  { %4623 = vmatpush3.bf16.msra.mxu1 %v5334_v1 }
 0x9f5   :  { %4624 = vmatprep.subr.bf16.mxu1 %v5033_v21 }
 0xab2   :  { %v1363_v35 = vpop.f32.mrb[10].mxu1 }
 0xab3   :  { %v1364_v36 = vadd.f32 %v5372_v10, %v1363_v35  ;;  %v4211_v37 = vpop.f32.mrb[11].mxu1 }
 0xab5   :  { %1374 = vrot.lane.b32.xlu1 %v1364_v36, %s5034_s28  ;;  %v3829_v41 = vmul.f32 -1.442695, %v1364_v36 }
 0xab7   :  { %4841 = vpow2.f32 %v3829_v41 }
 0xaba   :  { %v1463_v38 = vpop.f32.mrb[2].mxu1 }
 0xabb   :  { %v4777_v39 = vadd.f32 %v5241_v25, %v1463_v38  ;;  %v4222_v40 = vpop.f32.mrb[3].mxu1 }
 0xabd   :  { %1475 = vrot.lane.b32.xlu0 %v4777_v39, %s5034_s28  ;;  %v3831_v42 = vmul.f32 -1.442695, %v4777_v39 }
 0xabf   :  { %4843 = vpow2.f32 %v3831_v42 }
 0xac1   :  { %v4842_v43 = vpop.eup %4841 }
 0xac2   :  { %v1370_v44 = vadd.f32 1.0, %v4842_v43 }
 0xac4   :  { %4845 = vrcp.f32 %v1370_v44 }
 0xac9   :  { %v4844_v45 = vpop.eup %4843 }
 0xaca   :  { %v1471_v46 = vadd.f32 1.0, %v4844_v45 }
 0xacc   :  { %4847 = vrcp.f32 %v1471_v46 }
 0xace   :  { %v4846_v47 = vpop.eup %4845 }
 0xad6   :  { %v4848_v51 = vpop.eup %4847 }
 0xb27   :  { %v1375_v48 = vpop.permute.xlu1 %1374 }
 0xb28   :  { %v1377_v50 = vmul.f32 %v4846_v47, %v1375_v48 }
 0xb2a   :  { %1379 = vrot.lane.b32.xlu1 %v1377_v50, %s5035_s14 }
 0xb2f   :  { %v1476_v52 = vpop.permute.xlu0 %1475 }
 0xb30   :  { %v1478_v53 = vmul.f32 %v4848_v51, %v1476_v52 }
 0xb32   :  { %1480 = vrot.lane.b32.xlu0 %v1478_v53, %s5035_s14 }
 0xb9c   :  { %v1380_v54 = vpop.permute.xlu1 %1379 }
 0xb9d   :  { %v1382_v55 = vadd.f32 %v1380_v54, %v1364_v36 }
 0xb9f   :  { %4849 = vtanh.f32 %v1382_v55 }
 0xba4   :  { %v1481_v56 = vpop.permute.xlu0 %1480 }
 0xba5   :  { %v1483_v58 = vadd.f32 %v4777_v39, %v1481_v56 }
 0xba7   :  { %4851 = vtanh.f32 %v1483_v58 }
 0xba9   :  { %v4850_v59 = vpop.eup %4849 }
 0xbaa   :  { %v1384_v60 = vsub.f32 %v1183_v29, %v4850_v59 }
 0xbac   :  { %1386 = vrot.lane.b32.xlu1 %v1384_v60, %s5036_s9 }
 0xbb1   :  { %v4852_v61 = vpop.eup %4851 }
 0xbb2   :  { %v1485_v62 = vsub.f32 %v1284_v31, %v4852_v61 }
 0xbb4   :  { %1487 = vrot.lane.b32.xlu0 %v1485_v62, %s5036_s9 }
 0xc1e   :  { %v1387_v63 = vpop.permute.xlu1 %1386 }
 0xc1f   :  { %v1389_v3 = vmul.f32 %v4846_v47, %v1387_v63 }
 0xc21   :  { %1391 = vrot.lane.b32.xlu1 %v1389_v3, %s5034_s28 }
 0xc26   :  { %v1488_v4 = vpop.permute.xlu0 %1487 }
 0xc27   :  { %v1490_v5 = vmul.f32 %v4848_v51, %v1488_v4 }
 0xc29   :  { %1492 = vrot.lane.b32.xlu0 %v1490_v5, %s5034_s28 }
 0xc93   :  { %v1392_v6 = vpop.permute.xlu1 %1391 }
 0xc94   :  { %v1394_v7 = vadd.f32 %v4850_v59, %v1392_v6 }
 0xc96   :  { %1501 = vrot.lane.b32.xlu0 %v1394_v7, %s5036_s9 }
 0xc9b   :  { %v1493_v8 = vpop.permute.xlu0 %1492 }
 0xc9c   :  { %v1495_v9 = vadd.f32 %v4852_v61, %v1493_v8 }
 0xc9e   :  { %1497 = vrot.lane.b32.xlu1 %v1495_v9, %s5035_s14 }
 0xd08   :  { %v1502_v11 = vpop.permute.xlu0 %1501 }
 0xd10   :  { %v1498_v12 = vpop.permute.xlu1 %1497 }
 0xd11   :  { %v1504_v13 = vsel %vm755_vm4, %v1498_v12, %v1502_v11 }
 0xd12   :  { %4240 = vmatmul.mubr.msk.f32.vlgmr.msra.gmra.mrb[10].mxu0 %vm871_vm5, %v1504_v13 }
 0xd13   :  { %4608 = vmatpush3.bf16.msra.mxu0 %v5223_v20  ;;  %4250 = vmatprep.mubr.msk.f32.mxu0 %vm5032_vm0, %v5031_v0 }
 0xd14   :  { %4609 = vmatprep.subr.bf16.mxu0 %v5033_v21 }
 0xd17   :  { %4611 = vmatpush3.bf16.msra.mxu0 %v5228_v24 }
 0xd18   :  { %4630 = vmatprep.subr.bf16.mxu0 %v5033_v21 }
 0xd1a   :  { %4251 = vmatmul.mubr.msk.f32.vlgmr.msra.gmra.mrb[4].mxu0 %vm755_vm4, %v1498_v12 }
 0xd1b   :  { %4632 = vmatpush3.bf16.msra.mxu0 %v5273_v49  ;;  %4299 = vmatprep.mubr.msk.f32.mxu0 %vm5032_vm0, %v5031_v0 }
 0xd1c   :  { %4633 = vmatprep.subr.bf16.mxu0 %v5033_v21 }
 0xd1f   :  { %4635 = vmatpush3.bf16.msra.mxu0 %v5296_v57 }
 0xd20   :  { %4636 = vmatprep.subr.bf16.mxu0 %v5033_v21 }
 0xd23   :  { %4638 = vmatpush3.bf16.msra.mxu0 %v5317_v2 }
 0xd24   :  { %4639 = vmatprep.subr.bf16.mxu0 %v5033_v21 }
 0xd27   :  { %4641 = vmatpush3.bf16.msra.mxu0 %v5334_v1 }
 0xd28   :  { %4642 = vmatprep.subr.bf16.mxu0 %v5033_v21 }
 0xde5   :  { %v1574_v14 = vpop.f32.mrb[10].mxu0 }
 0xde6   :  { %v1575_v15 = vadd.f32 %v5372_v10, %v1574_v14  ;;  %v4241_v16 = vpop.f32.mrb[11].mxu0 }
 0xde8   :  { %1585 = vrot.lane.b32.xlu1 %v1575_v15, %s5034_s28  ;;  %v3833_v22 = vmul.f32 -1.442695, %v1575_v15 }
 0xdea   :  { %4853 = vpow2.f32 %v3833_v22 }
 0xded   :  { %v1674_v17 = vpop.f32.mrb[4].mxu0 }
 0xdee   :  { %v4778_v18 = vadd.f32 %v5241_v25, %v1674_v17  ;;  %v4252_v19 = vpop.f32.mrb[5].mxu0 }
 0xdf0   :  { %1686 = vrot.lane.b32.xlu0 %v4778_v18, %s5034_s28  ;;  %v3835_v23 = vmul.f32 -1.442695, %v4778_v18 }
 0xdf2   :  { %4855 = vpow2.f32 %v3835_v23 }
 0xdf4   :  { %v4854_v26 = vpop.eup %4853 }
 0xdf5   :  { %v1581_v27 = vadd.f32 1.0, %v4854_v26 }
 0xdf7   :  { %4857 = vrcp.f32 %v1581_v27 }
 0xdfc   :  { %v4856_v28 = vpop.eup %4855 }
 0xdfd   :  { %v1682_v29 = vadd.f32 1.0, %v4856_v28 }
 0xdff   :  { %4859 = vrcp.f32 %v1682_v29 }
 0xe01   :  { %v4858_v30 = vpop.eup %4857 }
 0xe09   :  { %v4860_v33 = vpop.eup %4859 }
 0xe5a   :  { %v1586_v31 = vpop.permute.xlu1 %1585 }
 0xe5b   :  { %v1588_v32 = vmul.f32 %v4858_v30, %v1586_v31 }
 0xe5d   :  { %1590 = vrot.lane.b32.xlu1 %v1588_v32, %s5035_s14 }
 0xe62   :  { %v1687_v34 = vpop.permute.xlu0 %1686 }
 0xe63   :  { %v1689_v35 = vmul.f32 %v4860_v33, %v1687_v34 }
 0xe65   :  { %1691 = vrot.lane.b32.xlu0 %v1689_v35, %s5035_s14 }
 0xecf   :  { %v1591_v36 = vpop.permute.xlu1 %1590 }
 0xed0   :  { %v1593_v37 = vadd.f32 %v1591_v36, %v1575_v15 }
 0xed2   :  { %4861 = vtanh.f32 %v1593_v37 }
 0xed7   :  { %v1692_v38 = vpop.permute.xlu0 %1691 }
 0xed8   :  { %v1694_v39 = vadd.f32 %v4778_v18, %v1692_v38 }
 0xeda   :  { %4863 = vtanh.f32 %v1694_v39 }
 0xedc   :  { %v4862_v40 = vpop.eup %4861 }
 0xedd   :  { %v1595_v41 = vsub.f32 %v1394_v7, %v4862_v40 }
 0xedf   :  { %1597 = vrot.lane.b32.xlu1 %v1595_v41, %s5036_s9 }
 0xee4   :  { %v4864_v42 = vpop.eup %4863 }
 0xee5   :  { %v1696_v43 = vsub.f32 %v1495_v9, %v4864_v42 }
 0xee7   :  { %1698 = vrot.lane.b32.xlu0 %v1696_v43, %s5036_s9 }
 0xf51   :  { %v1598_v44 = vpop.permute.xlu1 %1597 }
 0xf52   :  { %v1600_v45 = vmul.f32 %v4858_v30, %v1598_v44 }
 0xf54   :  { %1602 = vrot.lane.b32.xlu1 %v1600_v45, %s5034_s28 }
 0xf59   :  { %v1699_v46 = vpop.permute.xlu0 %1698 }
 0xf5a   :  { %v1701_v47 = vmul.f32 %v4860_v33, %v1699_v46 }
 0xf5c   :  { %1703 = vrot.lane.b32.xlu0 %v1701_v47, %s5034_s28 }
 0xfc6   :  { %v1603_v48 = vpop.permute.xlu1 %1602 }
 0xfc7   :  { %v1605_v50 = vadd.f32 %v4862_v40, %v1603_v48 }
 0xfc9   :  { %1712 = vrot.lane.b32.xlu0 %v1605_v50, %s5036_s9 }
 0xfce   :  { %v1704_v51 = vpop.permute.xlu0 %1703 }
 0xfcf   :  { %v1706_v52 = vadd.f32 %v4864_v42, %v1704_v51 }
 0xfd1   :  { %1708 = vrot.lane.b32.xlu1 %v1706_v52, %s5035_s14 }
0x103b   :  { %v1713_v53 = vpop.permute.xlu0 %1712 }
0x1043   :  { %v1709_v54 = vpop.permute.xlu1 %1708 }
0x1044   :  { %v1715_v55 = vsel %vm755_vm4, %v1709_v54, %v1713_v53 }
0x1045   :  { %4270 = vmatmul.mubr.msk.f32.vlgmr.msra.gmra.mrb[12].mxu1 %vm871_vm5, %v1715_v55 }
0x1046   :  { %4626 = vmatpush3.bf16.msra.mxu1 %v5223_v20  ;;  %4280 = vmatprep.mubr.msk.f32.mxu1 %vm5032_vm0, %v5031_v0 }
0x1047   :  { %4627 = vmatprep.subr.bf16.mxu1 %v5033_v21 }
0x104a   :  { %4629 = vmatpush3.bf16.msra.mxu1 %v5228_v24 }
0x104b   :  { %4648 = vmatprep.subr.bf16.mxu1 %v5033_v21 }
0x104d   :  { %4281 = vmatmul.mubr.msk.f32.vlgmr.msra.gmra.mrb[4].mxu1 %vm755_vm4, %v1709_v54 }
0x104e   :  { %4650 = vmatpush3.bf16.msra.mxu1 %v5273_v49  ;;  %4329 = vmatprep.mubr.msk.f32.mxu1 %vm5032_vm0, %v5031_v0 }
0x104f   :  { %4651 = vmatprep.subr.bf16.mxu1 %v5033_v21 }
0x1052   :  { %4653 = vmatpush3.bf16.msra.mxu1 %v5296_v57 }
0x1053   :  { %4654 = vmatprep.subr.bf16.mxu1 %v5033_v21 }
0x1056   :  { %4656 = vmatpush3.bf16.msra.mxu1 %v5317_v2 }
0x1057   :  { %4657 = vmatprep.subr.bf16.mxu1 %v5033_v21 }
0x105a   :  { %4659 = vmatpush3.bf16.msra.mxu1 %v5334_v1 }
0x105b   :  { %4660 = vmatprep.subr.bf16.mxu1 %v5033_v21 }
0x1118   :  { %v1785_v56 = vpop.f32.mrb[12].mxu1 }
0x1119   :  { %v1786_v58 = vadd.f32 %v5372_v10, %v1785_v56  ;;  %v4271_v59 = vpop.f32.mrb[13].mxu1 }
0x111b   :  { %1796 = vrot.lane.b32.xlu1 %v1786_v58, %s5034_s28  ;;  %v3837_v63 = vmul.f32 -1.442695, %v1786_v58 }
0x111d   :  { %4865 = vpow2.f32 %v3837_v63 }
0x1120   :  { %v1885_v60 = vpop.f32.mrb[4].mxu1 }
0x1121   :  { %v4779_v61 = vadd.f32 %v5241_v25, %v1885_v60  ;;  %v4282_v62 = vpop.f32.mrb[5].mxu1 }
0x1123   :  { %1897 = vrot.lane.b32.xlu0 %v4779_v61, %s5034_s28  ;;  %v3839_v3 = vmul.f32 -1.442695, %v4779_v61 }
0x1125   :  { %4867 = vpow2.f32 %v3839_v3 }
0x1127   :  { %v4866_v4 = vpop.eup %4865 }
0x1128   :  { %v1792_v5 = vadd.f32 1.0, %v4866_v4 }
0x112a   :  { %4869 = vrcp.f32 %v1792_v5 }
0x112f   :  { %v4868_v6 = vpop.eup %4867 }
0x1130   :  { %v1893_v7 = vadd.f32 1.0, %v4868_v6 }
0x1132   :  { %4871 = vrcp.f32 %v1893_v7 }
0x1134   :  { %v4870_v8 = vpop.eup %4869 }
0x113c   :  { %v4872_v12 = vpop.eup %4871 }
0x118d   :  { %v1797_v9 = vpop.permute.xlu1 %1796 }
0x118e   :  { %v1799_v11 = vmul.f32 %v4870_v8, %v1797_v9 }
0x1190   :  { %1801 = vrot.lane.b32.xlu1 %v1799_v11, %s5035_s14 }
0x1195   :  { %v1898_v13 = vpop.permute.xlu0 %1897 }
0x1196   :  { %v1900_v14 = vmul.f32 %v4872_v12, %v1898_v13 }
0x1198   :  { %1902 = vrot.lane.b32.xlu0 %v1900_v14, %s5035_s14 }
0x1202   :  { %v1802_v15 = vpop.permute.xlu1 %1801 }
0x1203   :  { %v1804_v16 = vadd.f32 %v1802_v15, %v1786_v58  ;;  %v4955_v15 = vld [vmem:[%s5899_s4] ss:$0 sm:$0xff]  ;;  %s5037_s4 = smov 67  }
0x1205   :  { %4873 = vtanh.f32 %v1804_v16 }
0x120a   :  { %v1903_v17 = vpop.permute.xlu0 %1902 }
0x120b   :  { %v1905_v18 = vadd.f32 %v4779_v61, %v1903_v17 }
0x120d   :  { %4875 = vtanh.f32 %v1905_v18 }
0x120f   :  { %v4874_v19 = vpop.eup %4873 }
0x1210   :  { %v1806_v22 = vsub.f32 %v1605_v50, %v4874_v19 }
0x1212   :  { %1808 = vrot.lane.b32.xlu1 %v1806_v22, %s5036_s9 }
0x1217   :  { %v4876_v23 = vpop.eup %4875 }
0x1218   :  { %v1907_v26 = vsub.f32 %v1706_v52, %v4876_v23 }
0x121a   :  { %1909 = vrot.lane.b32.xlu0 %v1907_v26, %s5036_s9 }
0x1284   :  { %v1809_v27 = vpop.permute.xlu1 %1808 }
0x1285   :  { %v1811_v28 = vmul.f32 %v4870_v8, %v1809_v27 }
0x1287   :  { %1813 = vrot.lane.b32.xlu1 %v1811_v28, %s5034_s28 }
0x128c   :  { %v1910_v29 = vpop.permute.xlu0 %1909 }
0x128d   :  { %v1912_v30 = vmul.f32 %v4872_v12, %v1910_v29 }
0x128f   :  { %1914 = vrot.lane.b32.xlu0 %v1912_v30, %s5034_s28 }
0x12f9   :  { %v1814_v31 = vpop.permute.xlu1 %1813 }
0x12fa   :  { %v1816_v32 = vadd.f32 %v4874_v19, %v1814_v31 }
0x12fc   :  { %1923 = vrot.lane.b32.xlu0 %v1816_v32, %s5036_s9 }
0x1301   :  { %v1915_v33 = vpop.permute.xlu0 %1914 }
0x1302   :  { %v1917_v34 = vadd.f32 %v4876_v23, %v1915_v33 }
0x1304   :  { %1919 = vrot.lane.b32.xlu1 %v1917_v34, %s5035_s14 }
0x136e   :  { %v1924_v35 = vpop.permute.xlu0 %1923 }
0x1376   :  { %v1920_v36 = vpop.permute.xlu1 %1919 }
0x1377   :  { %v1926_v37 = vsel %vm755_vm4, %v1920_v36, %v1924_v35 }
0x1378   :  { %4300 = vmatmul.mubr.msk.f32.vlgmr.msra.gmra.mrb[12].mxu0 %vm871_vm5, %v1926_v37 }
0x1379   :  { %4644 = vmatpush3.bf16.msra.mxu0 %v5223_v20  ;;  %4310 = vmatprep.mubr.msk.f32.mxu0 %vm5032_vm0, %v5031_v0 }
0x137a   :  { %4645 = vmatprep.subr.bf16.mxu0 %v5033_v21 }
0x137d   :  { %4647 = vmatpush3.bf16.msra.mxu0 %v5228_v24 }
0x137e   :  { %4666 = vmatprep.subr.bf16.mxu0 %v5033_v21 }
0x1380   :  { %4311 = vmatmul.mubr.msk.f32.vlgmr.msra.gmra.mrb[6].mxu0 %vm755_vm4, %v1920_v36 }
0x1381   :  { %4668 = vmatpush3.bf16.msra.mxu0 %v5273_v49  ;;  %4359 = vmatprep.mubr.msk.f32.mxu0 %vm5032_vm0, %v5031_v0 }
0x1382   :  { %4669 = vmatprep.subr.bf16.mxu0 %v5033_v21 }
0x1385   :  { %4671 = vmatpush3.bf16.msra.mxu0 %v5296_v57 }
0x1386   :  { %4672 = vmatprep.subr.bf16.mxu0 %v5033_v21 }
0x1389   :  { %4674 = vmatpush3.bf16.msra.mxu0 %v5317_v2 }
0x138a   :  { %4675 = vmatprep.subr.bf16.mxu0 %v5033_v21 }
0x138d   :  { %4677 = vmatpush3.bf16.msra.mxu0 %v5334_v1 }
0x138e   :  { %4678 = vmatprep.subr.bf16.mxu0 %v5033_v21 }
0x144b   :  { %v1996_v38 = vpop.f32.mrb[12].mxu0 }
0x144c   :  { %v1997_v49 = vadd.f32 %v5372_v10, %v1996_v38  ;;  %v4301_v39 = vpop.f32.mrb[13].mxu0 }
0x144e   :  { %2007 = vrot.lane.b32.xlu1 %v1997_v49, %s5034_s28  ;;  %v3841_v42 = vmul.f32 -1.442695, %v1997_v49 }
0x1450   :  { %4877 = vpow2.f32 %v3841_v42 }
0x1453   :  { %v2096_v40 = vpop.f32.mrb[6].mxu0 }
0x1454   :  { %v4780_v41 = vadd.f32 %v5241_v25, %v2096_v40  ;;  %v4312_v57 = vpop.f32.mrb[7].mxu0 }
0x1456   :  { %2108 = vrot.lane.b32.xlu0 %v4780_v41, %s5034_s28  ;;  %v3843_v2 = vmul.f32 -1.442695, %v4780_v41 }
0x1458   :  { %4879 = vpow2.f32 %v3843_v2 }
0x145a   :  { %v4878_v43 = vpop.eup %4877 }
0x145b   :  { %v2003_v1 = vadd.f32 1.0, %v4878_v43 }
0x145d   :  { %4881 = vrcp.f32 %v2003_v1 }
0x1462   :  { %v4880_v44 = vpop.eup %4879 }
0x1463   :  { %v2104_v45 = vadd.f32 1.0, %v4880_v44 }
0x1465   :  { %4883 = vrcp.f32 %v2104_v45  ;;  %v2460_v45 = vld [vmem:[#allocation4] sm:$0xff] }
0x1467   :  { %v4882_v46 = vpop.eup %4881 }
0x146f   :  { %v4884_v50 = vpop.eup %4883 }
0x14c0   :  { %v2008_v47 = vpop.permute.xlu1 %2007 }
0x14c1   :  { %v2010_v48 = vmul.f32 %v4882_v46, %v2008_v47 }
0x14c3   :  { %2012 = vrot.lane.b32.xlu1 %v2010_v48, %s5035_s14 }
0x14c8   :  { %v2109_v25 = vpop.permute.xlu0 %2108 }
0x14c9   :  { %v2111_v51 = vmul.f32 %v4884_v50, %v2109_v25  ;;  %v2462_v25 = vld [vmem:[#allocation4 + $0x10] sm:$0xff] }
0x14cb   :  { %2113 = vrot.lane.b32.xlu0 %v2111_v51, %s5035_s14  ;;  %v2463_v51 = vld [vmem:[#allocation4 + $0x18] sm:$0xff] }
0x1535   :  { %v2013_v52 = vpop.permute.xlu1 %2012 }
0x1536   :  { %v2015_v53 = vadd.f32 %v2013_v52, %v1997_v49 }
0x1538   :  { %4885 = vtanh.f32 %v2015_v53  ;;  %v5579_v53 = vpack.c.bf16 %v2463_v51, %v2462_v25 }
0x153d   :  { %v2114_v54 = vpop.permute.xlu0 %2113 }
0x153e   :  { %v2116_v55 = vadd.f32 %v4780_v41, %v2114_v54  ;;  %v5588_v54 = vld [vmem:[%s5896_s1] sm:$0x3] }
0x1540   :  { %4887 = vtanh.f32 %v2116_v55 }
0x1542   :  { %v4886_v56 = vpop.eup %4885 }
0x1543   :  { %v2017_v58 = vsub.f32 %v1816_v32, %v4886_v56 }
0x1545   :  { %2019 = vrot.lane.b32.xlu1 %v2017_v58, %s5036_s9 }
0x154a   :  { %v4888_v59 = vpop.eup %4887 }
0x154b   :  { %v2118_v60 = vsub.f32 %v1917_v34, %v4888_v59 }
0x154d   :  { %2120 = vrot.lane.b32.xlu0 %v2118_v60, %s5036_s9 }
0x15b7   :  { %v2020_v61 = vpop.permute.xlu1 %2019 }
0x15b8   :  { %v2022_v62 = vmul.f32 %v4882_v46, %v2020_v61  ;;  %v2461_v46 = vld [vmem:[#allocation4 + $0x8] sm:$0xff] }
0x15b9   :  { %v5574_v47 = vpack.c.bf16 %v2461_v46, %v2460_v45  ;;  %v5647_v46 = vld [vmem:[%s5905_s10] ss:$0 sm:$0xff] }
0x15ba   :  { %2024 = vrot.lane.b32.xlu1 %v2022_v62, %s5034_s28  ;;  %v5603_v62 = vld [vmem:[%s5903_s8] ss:$0 sm:$0xff] }
0x15bf   :  { %v2121_v63 = vpop.permute.xlu0 %2120 }
0x15c0   :  { %v2123_v3 = vmul.f32 %v4884_v50, %v2121_v63 }
0x15c2   :  { %2125 = vrot.lane.b32.xlu0 %v2123_v3, %s5034_s28 }
0x162c   :  { %v2025_v4 = vpop.permute.xlu1 %2024 }
0x162d   :  { %v2027_v5 = vadd.f32 %v4886_v56, %v2025_v4  ;;  %v2464_v56 = vld [vmem:[#allocation4 + $0x20] sm:$0x7] }
0x162f   :  { %2134 = vrot.lane.b32.xlu0 %v2027_v5, %s5036_s9 }
0x1634   :  { %v2126_v6 = vpop.permute.xlu0 %2125 }
0x1635   :  { %v2128_v7 = vadd.f32 %v4888_v59, %v2126_v6 }
0x1637   :  { %2130 = vrot.lane.b32.xlu1 %v2128_v7, %s5035_s14 }
0x16a1   :  { %v2135_v8 = vpop.permute.xlu0 %2134 }
0x16a9   :  { %v2131_v9 = vpop.permute.xlu1 %2130 }
0x16aa   :  { %v2137_v11 = vsel %vm755_vm4, %v2131_v9, %v2135_v8 }
0x16ab   :  { %4330 = vmatmul.mubr.msk.f32.vlgmr.msra.gmra.mrb[14].mxu1 %vm871_vm5, %v2137_v11 }
0x16ac   :  { %4662 = vmatpush3.bf16.msra.mxu1 %v5223_v20  ;;  %4340 = vmatprep.mubr.msk.f32.mxu1 %vm5032_vm0, %v5031_v0 }
0x16ad   :  { %4663 = vmatprep.subr.bf16.mxu1 %v5033_v21 }
0x16b0   :  { %4665 = vmatpush3.bf16.msra.mxu1 %v5228_v24 }
0x16b1   :  { %4684 = vmatprep.subr.bf16.mxu1 %v5033_v21 }
0x16b3   :  { %4341 = vmatmul.mubr.msk.f32.vlgmr.msra.gmra.mrb[6].mxu1 %vm755_vm4, %v2131_v9 }
0x16b4   :  { %4391 = vmatprep.mubr.msk.f32.mxu1 %vm5032_vm0, %v5031_v0 }
0x177e   :  { %v2207_v12 = vpop.f32.mrb[14].mxu1 }
0x177f   :  { %v2208_v13 = vadd.f32 %v5372_v10, %v2207_v12  ;;  %v4331_v14 = vpop.f32.mrb[15].mxu1 }
0x1781   :  { %2218 = vrot.lane.b32.xlu1 %v2208_v13, %s5034_s28  ;;  %v3845_v17 = vmul.f32 -1.442695, %v2208_v13 }
0x1783   :  { %4889 = vpow2.f32 %v3845_v17 }
0x1786   :  { %v2307_v20 = vpop.f32.mrb[6].mxu1 }
0x1787   :  { %v4781_v16 = vadd.f32 %v4955_v15, %v2307_v20  ;;  %v4342_v24 = vpop.f32.mrb[7].mxu1 }
0x1789   :  { %2319 = vrot.lane.b32.xlu0 %v4781_v16, %s5034_s28  ;;  %v3847_v18 = vmul.f32 -1.442695, %v4781_v16 }
0x178b   :  { %4891 = vpow2.f32 %v3847_v18 }
0x178d   :  { %v4890_v19 = vpop.eup %4889 }
0x178e   :  { %v2214_v22 = vadd.f32 1.0, %v4890_v19 }
0x1790   :  { %4893 = vrcp.f32 %v2214_v22 }
0x1795   :  { %v4892_v23 = vpop.eup %4891 }
0x1796   :  { %v2315_v26 = vadd.f32 1.0, %v4892_v23 }
0x1798   :  { %4895 = vrcp.f32 %v2315_v26 }
0x179a   :  { %v4894_v27 = vpop.eup %4893 }
0x17a2   :  { %v4896_v30 = vpop.eup %4895 }
0x17f3   :  { %v2219_v28 = vpop.permute.xlu1 %2218 }
0x17f4   :  { %v2221_v29 = vmul.f32 %v4894_v27, %v2219_v28 }
0x17f6   :  { %2223 = vrot.lane.b32.xlu1 %v2221_v29, %s5035_s14  ;;  %v2580_v29 = vld [vmem:[#allocation6] sm:$0xff] }
0x17fb   :  { %v2320_v31 = vpop.permute.xlu0 %2319 }
0x17fc   :  { %v2322_v32 = vmul.f32 %v4896_v30, %v2320_v31  ;;  %v2582_v31 = vld [vmem:[#allocation6 + $0x10] sm:$0xff] }
0x17fe   :  { %2324 = vrot.lane.b32.xlu0 %v2322_v32, %s5035_s14 }
0x1868   :  { %v2224_v33 = vpop.permute.xlu1 %2223 }
0x1869   :  { %v2226_v34 = vadd.f32 %v2224_v33, %v2208_v13  ;;  %v2583_v33 = vld [vmem:[#allocation6 + $0x18] sm:$0xff] }
0x186b   :  { %4897 = vtanh.f32 %v2226_v34  ;;  %v5617_v34 = vpack.c.bf16 %v2583_v33, %v2582_v31 }
0x1870   :  { %v2325_v35 = vpop.permute.xlu0 %2324 }
0x1871   :  { %v2327_v36 = vadd.f32 %v4781_v16, %v2325_v35 }
0x1873   :  { %4899 = vtanh.f32 %v2327_v36 }
0x1875   :  { %v4898_v37 = vpop.eup %4897 }
0x1876   :  { %v2228_v38 = vsub.f32 %v2027_v5, %v4898_v37 }
0x1878   :  { %2230 = vrot.lane.b32.xlu1 %v2228_v38, %s5036_s9  ;;  %v2585_v38 = vld [vmem:[#allocation6 + $0x28] sm:$0xff] }
0x187d   :  { %v4900_v49 = vpop.eup %4899 }
0x187e   :  { %v2329_v39 = vsub.f32 %v2128_v7, %v4900_v49 }
0x1880   :  { %2331 = vrot.lane.b32.xlu0 %v2329_v39, %s5036_s9 }
0x18ea   :  { %v2231_v40 = vpop.permute.xlu1 %2230 }
0x18eb   :  { %v2233_v41 = vmul.f32 %v4894_v27, %v2231_v40  ;;  %v2587_v40 = vld [vmem:[#allocation6 + $0x38] sm:$0xff] }
0x18ed   :  { %2235 = vrot.lane.b32.xlu1 %v2233_v41, %s5034_s28 }
0x18f2   :  { %v2332_v57 = vpop.permute.xlu0 %2331 }
0x18f3   :  { %v2334_v42 = vmul.f32 %v4896_v30, %v2332_v57  ;;  %v2581_v30 = vld [vmem:[#allocation6 + $0x8] sm:$0xff] }
0x18f4   :  { %v5614_v32 = vpack.c.bf16 %v2581_v30, %v2580_v29 }
0x18f5   :  { %2336 = vrot.lane.b32.xlu0 %v2334_v42, %s5034_s28 }
0x18f6   :  { %4686 = vmatpush3.bf16.msra.mxu1 %v5614_v32 }
0x18f7   :  { %4687 = vmatprep.subr.bf16.mxu1 %v5033_v21 }
0x18fa   :  { %4689 = vmatpush3.bf16.msra.mxu1 %v5617_v34 }
0x18fb   :  { %4690 = vmatprep.subr.bf16.mxu1 %v5033_v21 }
0x195f   :  { %v2236_v2 = vpop.permute.xlu1 %2235 }
0x1960   :  { %v5564_v43 = vadd.f32 %v4898_v37, %v2236_v2  ;;  %v2584_v37 = vld [vmem:[#allocation6 + $0x20] sm:$0xff] }
0x1961   :  { %v5623_v39 = vpack.c.bf16 %v2585_v38, %v2584_v37 }
0x1962   :  { %2345 = vrot.lane.b32.xlu0 %v5564_v43, %s5036_s9 }
0x1963   :  { %4692 = vmatpush3.bf16.msra.mxu1 %v5623_v39 }
0x1964   :  { %4693 = vmatprep.subr.bf16.mxu1 %v5033_v21 }
0x1967   :  { %v2337_v1 = vpop.permute.xlu0 %2336 }
0x1968   :  { %v5568_v44 = vadd.f32 %v4900_v49, %v2337_v1  ;;  %v2586_v49 = vld [vmem:[#allocation6 + $0x30] sm:$0xff] }
0x1969   :  { %v5626_v41 = vpack.c.bf16 %v2587_v40, %v2586_v49 }
0x196a   :  { %2341 = vrot.lane.b32.xlu1 %v5568_v44, %s5035_s14 }
0x196b   :  { %4695 = vmatpush3.bf16.msra.mxu1 %v5626_v41 }
0x196c   :  { %4702 = vmatprep.subr.bf16.mxu1 %v5033_v21 }
0x196e   :  { %2455 = vrot.lane.b32.xlu1 %v5568_v44, %s5037_s4 }
0x19d4   :  { %v2346_v48 = vpop.permute.xlu0 %2345 }
0x19dc   :  { %v2342_v50 = vpop.permute.xlu1 %2341 }
0x19dd   :  { %v2348_v52 = vsel %vm755_vm4, %v2342_v50, %v2346_v48 }
0x19de   :  { %4360 = vmatmul.mubr.msk.f32.vlgmr.msra.gmra.mrb[14].mxu0 %vm871_vm5, %v2348_v52 }
0x19df   :  { %4680 = vmatpush3.bf16.msra.mxu0 %v5574_v47  ;;  %4372 = vmatprep.mubr.msk.f32.mxu0 %vm5032_vm0, %v5031_v0 }
0x19e0   :  { %4681 = vmatprep.subr.bf16.mxu0 %v5033_v21  ;;  %v2456_v55 = vpop.permute.xlu1 %2455 }
0x19e1   :  { %v2459_v58 = vsel %vm2458_vm6, %v5588_v54, %v2456_v55 }
0x19e3   :  { %4683 = vmatpush3.bf16.msra.mxu0 %v5579_v53 }
0x19e4   :  { %4370 = vmatprep.subr.mxu0 %v5031_v0 }
0x19e7   :  { %4371 = vmatpush3.msk.msra.mxu0 %vm2469_vm7, %v2464_v56 }
0x19e8   :  { %4373 = vmatmul.mubr.msk.f32.vlgmr.msra.gmra.mrb[16].mxu0 %vm2465_vm8, %v2459_v58  ;;  %4696 = vmatprep.subr.bf16.mxu0 %v5033_v21 }
0x19e9   :  { %4402 = vmatprep.mubr.msk.f32.mxu0 %vm5032_vm0, %v5031_v0 }
0x1ab1   :  { %v2418_v59 = vpop.f32.mrb[14].mxu0 }
0x1ab2   :  { %v2419_v60 = vadd.f32 %v5372_v10, %v2418_v59  ;;  %v4361_v61 = vpop.f32.mrb[15].mxu0 }
0x1ab4   :  { %2429 = vrot.lane.b32.xlu0 %v2419_v60, %s5034_s28  ;;  %v3849_v5 = vmul.f32 -1.442695, %v2419_v60 }
0x1ab6   :  { %4901 = vpow2.f32 %v3849_v5  ;;  %v2451_v5 = vld [vmem:[%s5906_s11 + $0x8] sm:$0xff] }
0x1abb   :  { %v2539_v63 = vpop.f32.mrb[16].mxu0 }
0x1abc   :  { %v2540_v3 = vadd.f32 %v5603_v62, %v2539_v63  ;;  %v4374_v4 = vpop.f32.mrb[17].mxu0 }
0x1abd   :  { %v2450_v4 = vld [vmem:[%s5906_s11] sm:$0xff] }
0x1abe   :  { %2550 = vrot.lane.b32.xlu1 %v2540_v3, %s5034_s28  ;;  %v3852_v6 = vmul.f32 -1.442695, %v2540_v3 }
0x1ac0   :  { %v4902_v7 = vpop.eup %4901  ;;  %4903 = vpow2.f32 %v3852_v6  ;;  %v2452_v6 = vld [vmem:[%s5906_s11 + $0x10] sm:$0xff] }
0x1ac1   :  { %v2425_v10 = vadd.f32 1.0, %v4902_v7  ;;  %v5662_v7 = vpack.c.bf16 %v2451_v5, %v2450_v4 }
0x1ac3   :  { %4905 = vrcp.f32 %v2425_v10  ;;  %v2453_v10 = vld [vmem:[%s5906_s11 + $0x18] sm:$0xff]  ;;  %4698 = vmatpush3.bf16.msra.mxu0 %v5662_v7 }
0x1ac4   :  { %4699 = vmatprep.subr.bf16.mxu0 %v5033_v21 }
0x1aca   :  { %v4904_v8 = vpop.eup %4903 }
0x1acb   :  { %v2546_v9 = vadd.f32 1.0, %v4904_v8  ;;  %v5668_v8 = vpack.c.bf16 %v2453_v10, %v2452_v6 }
0x1acd   :  { %v4906_v11 = vpop.eup %4905  ;;  %4907 = vrcp.f32 %v2546_v9  ;;  %4701 = vmatpush3.bf16.msra.mxu0 %v5668_v8 }
0x1ace   :  { %4708 = vmatprep.subr.bf16.mxu0 %v5033_v21 }
0x1ad7   :  { %v4908_v14 = vpop.eup %4907 }
0x1b26   :  { %v2430_v12 = vpop.permute.xlu0 %2429 }
0x1b27   :  { %v2432_v13 = vmul.f32 %v4906_v11, %v2430_v12 }
0x1b29   :  { %2434 = vrot.lane.b32.xlu0 %v2432_v13, %s5035_s14 }
0x1b30   :  { %v2551_v20 = vpop.permute.xlu1 %2550 }
0x1b31   :  { %v2553_v15 = vmul.f32 %v4908_v14, %v2551_v20  ;;  %v2801_v20 = vld [vmem:[#allocation4 + $0x20] sm:$0x7] }
0x1b33   :  { %2555 = vrot.lane.b32.xlu1 %v2553_v15, %s5035_s14  ;;  %v5038_v15 = vmov 1966171168  }
0x1b9b   :  { %v2435_v16 = vpop.permute.xlu0 %2434 }
0x1b9c   :  { %v2437_v24 = vadd.f32 %v2435_v16, %v2419_v60  ;;  %v2767_v16 = vunpack.c.l.s4 %v5038_v15 }
0x1b9e   :  { %4909 = vtanh.f32 %v2437_v24  ;;  %v2769_v24 = vlaneseq }
0x1ba5   :  { %v2556_v17 = vpop.permute.xlu1 %2555 }
0x1ba6   :  { %v2558_v18 = vadd.f32 %v2556_v17, %v2540_v3  ;;  %v2768_v17 = vunpack.c.0.s8 %v2767_v16 }
0x1ba8   :  { %v4910_v19 = vpop.eup %4909  ;;  %4911 = vtanh.f32 %v2558_v18  ;;  %v2770_v18 = vshrl.u32 %v2769_v24, 7 }
0x1ba9   :  { %v2439_v22 = vsub.f32 %v5564_v43, %v4910_v19 }
0x1bab   :  { %2441 = vrot.lane.b32.xlu0 %v2439_v22, %s5036_s9 }
0x1bb2   :  { %v4912_v23 = vpop.eup %4911 }
0x1bb3   :  { %v2560_v26 = vsub.f32 %v5568_v44, %v4912_v23 }
0x1bb5   :  { %2562 = vrot.lane.b32.xlu1 %v2560_v26, %s5036_s9  ;;  %v5699_v26 = vsub.s32 %v2768_v17, %v2770_v18 }
0x1c1d   :  { %v2442_v27 = vpop.permute.xlu0 %2441 }
0x1c1e   :  { %v2444_v28 = vmul.f32 %v4906_v11, %v2442_v27 }
0x1c20   :  { %2446 = vrot.lane.b32.xlu0 %v2444_v28, %s5034_s28 }
0x1c27   :  { %v2563_v35 = vpop.permute.xlu1 %2562 }
0x1c28   :  { %v2565_v36 = vmul.f32 %v4908_v14, %v2563_v35 }
0x1c2a   :  { %2567 = vrot.lane.b32.xlu1 %v2565_v36, %s5034_s28 }
0x1c92   :  { %v2447_v57 = vpop.permute.xlu0 %2446 }
0x1c93   :  { %v2449_v42 = vadd.f32 %v4910_v19, %v2447_v57  ;;  %v5696_v19 = vld [vmem:[%s5907_s12] ss:$0 sm:$0xff] }
0x1c95   :  { %2576 = vrot.lane.b32.xlu1 %v2449_v42, %s5036_s9 }
0x1c9c   :  { %v2568_v2 = vpop.permute.xlu1 %2567 }
0x1c9d   :  { %v5632_v43 = vadd.f32 %v4912_v23, %v2568_v2 }
0x1c9f   :  { %2572 = vrot.lane.b32.xlu0 %v5632_v43, %s5035_s14 }
0x1d07   :  { %v2577_v1 = vpop.permute.xlu1 %2576 }
0x1d11   :  { %v2573_v44 = vpop.permute.xlu0 %2572 }
0x1d12   :  { %v2579_v45 = vsel %vm755_vm4, %v2573_v44, %v2577_v1 }
0x1d13   :  { %4392 = vmatmul.mubr.msk.f32.vlgmr.msra.gmra.mrb[16].mxu1 %vm871_vm5, %v2579_v45 }
0x1d14   :  { %4704 = vmatpush3.bf16.msra.mxu1 %v5574_v47  ;;  %4415 = vmatprep.mubr.msk.f32.mxu1 %vm5032_vm0, %v5031_v0 }
0x1d15   :  { %4705 = vmatprep.subr.bf16.mxu1 %v5033_v21 }
0x1d18   :  { %4707 = vmatpush3.bf16.msra.mxu1 %v5579_v53 }
0x1d19   :  { %4413 = vmatprep.subr.mxu1 %v5031_v0 }
0x1d1c   :  { %4414 = vmatpush3.msk.msra.mxu1 %vm2469_vm7, %v2801_v20 }
0x1d1d   :  { %4720 = vmatprep.subr.bf16.mxu1 %v5033_v21 }
0x1de6   :  { %v2657_v48 = vpop.f32.mrb[16].mxu1 }
0x1de7   :  { %v2658_v50 = vadd.f32 %v5647_v46, %v2657_v48  ;;  %v4393_v25 = vpop.f32.mrb[17].mxu1 }
0x1de9   :  { %2668 = vrot.lane.b32.xlu0 %v2658_v50, %s5034_s28  ;;  %v3854_v51 = vmul.f32 -1.442695, %v2658_v50 }
0x1deb   :  { %4913 = vpow2.f32 %v3854_v51 }
0x1df5   :  { %v4914_v52 = vpop.eup %4913 }
0x1df6   :  { %v2664_v55 = vadd.f32 1.0, %v4914_v52 }
0x1df8   :  { %4915 = vrcp.f32 %v2664_v55 }
0x1e02   :  { %v4916_v56 = vpop.eup %4915 }
0x1e5b   :  { %v2669_v58 = vpop.permute.xlu0 %2668 }
0x1e5c   :  { %v2671_v59 = vmul.f32 %v4916_v56, %v2669_v58 }
0x1e5e   :  { %2673 = vrot.lane.b32.xlu1 %v2671_v59, %s5035_s14 }
0x1ed0   :  { %v2674_v60 = vpop.permute.xlu1 %2673 }
0x1ed1   :  { %v2676_v61 = vadd.f32 %v2674_v60, %v2658_v50 }
0x1ed3   :  { %4917 = vtanh.f32 %v2676_v61 }
0x1edd   :  { %v4918_v63 = vpop.eup %4917 }
0x1ede   :  { %v2678_v3 = vsub.f32 %v2449_v42, %v4918_v63 }
0x1ee0   :  { %2680 = vrot.lane.b32.xlu0 %v2678_v3, %s5036_s9 }
0x1f52   :  { %v2681_v9 = vpop.permute.xlu0 %2680 }
0x1f53   :  { %v2683_v11 = vmul.f32 %v4916_v56, %v2681_v9 }
0x1f55   :  { %2685 = vrot.lane.b32.xlu1 %v2683_v11, %s5034_s28 }
0x1f59   :  { %2793 = vrot.lane.b32.xlu1 %v5632_v43, %s5037_s4 }
0x1fc7   :  { %v2686_v12 = vpop.permute.xlu1 %2685 }
0x1fc8   :  { %v5676_v13 = vadd.f32 %v4918_v63, %v2686_v12 }
0x1fca   :  { %2690 = vrot.lane.b32.xlu0 %v5676_v13, %s5035_s14 }
0x1fcb   :  { %v2794_v29 = vpop.permute.xlu1 %2793 }
0x203c   :  { %v2691_v14 = vpop.permute.xlu0 %2690 }
0x203d   :  { %4403 = vmatmul.mubr.msk.f32.vlgmr.msra.gmra.mrb[18].mxu0 %vm755_vm4, %v2691_v14 }
0x203e   :  { %4710 = vmatpush3.bf16.msra.mxu0 %v5614_v32  ;;  %4434 = vmatprep.mubr.msk.f32.mxu0 %vm5032_vm0, %v5031_v0 }
0x203f   :  { %4711 = vmatprep.subr.bf16.mxu0 %v5033_v21 }
0x2042   :  { %4713 = vmatpush3.bf16.msra.mxu0 %v5617_v34 }
0x2043   :  { %4714 = vmatprep.subr.bf16.mxu0 %v5033_v21 }
0x2046   :  { %4716 = vmatpush3.bf16.msra.mxu0 %v5623_v39 }
0x2047   :  { %4717 = vmatprep.subr.bf16.mxu0 %v5033_v21 }
0x204a   :  { %4719 = vmatpush3.bf16.msra.mxu0 %v5626_v41 }
0x204b   :  { %4726 = vmatprep.subr.bf16.mxu0 %v5033_v21 }
0x2110   :  { %v2760_v22 = vpop.f32.mrb[18].mxu0 }
0x2111   :  { %v2761_v23 = vadd.f32 %v5696_v19, %v2760_v22  ;;  %v4404_v27 = vpop.f32.mrb[19].mxu0 }
0x2113   :  { %v5702_v28 = vadd.f32 %v2761_v23, %v5588_v54 }
0x2115   :  { %v2772_v30 = vrot.slane %v5702_v28, %v5699_v26  ;;  %v2796_v31 = vsel %vm2458_vm6, %v5702_v28, %v2794_v29 }
0x2116   :  { %4416 = vmatmul.mubr.msk.f32.vlgmr.msra.gmra.mrb[18].mxu1 %vm2465_vm8, %v2796_v31 }
0x2117   :  { %v2773_v33 = vcombine.high %v2772_v30, %v2772_v30  ;;  %v2780_v35 = vrot.slane %v2772_v30, %v5699_v26  ;;  %4722 = vmatpush3.bf16.msra.mxu1 %v5662_v7  ;;  %4445 = vmatprep.mubr.msk.f32.mxu1 %vm5032_vm0, %v5031_v0 }
0x2118   :  { %4723 = vmatprep.subr.bf16.mxu1 %v5033_v21 }
0x2119   :  { %v2787_v54 = vrot.slane %v2773_v33, %v5699_v26  ;;  %2791 = vst.msk [vmem:[%s5908_s13] sm:$0x1] %vm2790_vm9, %v2780_v35 }
0x211b   :  { %2792 = vst.msk [vmem:[%s5908_s13 + $0x4] sm:$0x1] %vm2790_vm9, %v2787_v54  ;;  %4725 = vmatpush3.bf16.msra.mxu1 %v5668_v8 }
0x211c   :  { %4732 = vmatprep.subr.bf16.mxu1 %v5033_v21 }
0x21e9   :  { %v2874_v36 = vpop.f32.mrb[18].mxu1 }
0x21ea   :  { %v2875_v37 = vadd.f32 %v5603_v62, %v2874_v36  ;;  %v4417_v38 = vpop.f32.mrb[19].mxu1 }
0x21ec   :  { %2885 = vrot.lane.b32.xlu0 %v2875_v37, %s5034_s28  ;;  %v3858_v49 = vmul.f32 -1.442695, %v2875_v37 }
0x21ee   :  { %4919 = vpow2.f32 %v3858_v49 }
0x21f8   :  { %v4920_v40 = vpop.eup %4919 }
0x21f9   :  { %v2881_v57 = vadd.f32 1.0, %v4920_v40 }
0x21fb   :  { %4921 = vrcp.f32 %v2881_v57 }
0x2205   :  { %v4922_v42 = vpop.eup %4921 }
0x225e   :  { %v2886_v2 = vpop.permute.xlu0 %2885 }
0x225f   :  { %v2888_v1 = vmul.f32 %v4922_v42, %v2886_v2 }
0x2261   :  { %2890 = vrot.lane.b32.xlu1 %v2888_v1, %s5035_s14 }
0x22d3   :  { %v2891_v44 = vpop.permute.xlu1 %2890 }
0x22d4   :  { %v2893_v45 = vadd.f32 %v2891_v44, %v2875_v37 }
0x22d6   :  { %4923 = vtanh.f32 %v2893_v45 }
0x22e0   :  { %v4924_v48 = vpop.eup %4923 }
0x22e1   :  { %v2895_v50 = vsub.f32 %v5632_v43, %v4924_v48 }
0x22e3   :  { %2897 = vrot.lane.b32.xlu0 %v2895_v50, %s5036_s9 }
0x2355   :  { %v2898_v25 = vpop.permute.xlu0 %2897 }
0x2356   :  { %v2900_v51 = vmul.f32 %v4922_v42, %v2898_v25 }
0x2358   :  { %2902 = vrot.lane.b32.xlu1 %v2900_v51, %s5034_s28 }
0x235c   :  { %2910 = vrot.lane.b32.xlu1 %v5676_v13, %s5036_s9 }
0x23ca   :  { %v2903_v52 = vpop.permute.xlu1 %2902 }
0x23cb   :  { %v5733_v55 = vadd.f32 %v4924_v48, %v2903_v52 }
0x23cd   :  { %2907 = vrot.lane.b32.xlu0 %v5733_v55, %s5035_s14 }
0x23ce   :  { %v2911_v56 = vpop.permute.xlu1 %2910 }
0x243f   :  { %v2908_v58 = vpop.permute.xlu0 %2907 }
0x2440   :  { %v2913_v59 = vsel %vm755_vm4, %v2908_v58, %v2911_v56 }
0x2441   :  { %4435 = vmatmul.mubr.msk.f32.vlgmr.msra.gmra.mrb[20].mxu0 %vm871_vm5, %v2913_v59 }
0x2442   :  { %4728 = vmatpush3.bf16.msra.mxu0 %v5574_v47  ;;  %4458 = vmatprep.mubr.msk.f32.mxu0 %vm5032_vm0, %v5031_v0 }
0x2443   :  { %4729 = vmatprep.subr.bf16.mxu0 %v5033_v21 }
0x2446   :  { %4731 = vmatpush3.bf16.msra.mxu0 %v5579_v53 }
0x2447   :  { %4456 = vmatprep.subr.mxu0 %v5031_v0 }
0x2514   :  { %v2991_v43 = vpop.f32.mrb[20].mxu0 }
0x2515   :  { %v2992_v60 = vadd.f32 %v5647_v46, %v2991_v43  ;;  %v4436_v61 = vpop.f32.mrb[21].mxu0 }
0x2517   :  { %3002 = vrot.lane.b32.xlu0 %v2992_v60, %s5034_s28  ;;  %v3860_v63 = vmul.f32 -1.442695, %v2992_v60 }
0x2519   :  { %4925 = vpow2.f32 %v3860_v63 }
0x2523   :  { %v4926_v3 = vpop.eup %4925 }
0x2524   :  { %v2998_v4 = vadd.f32 1.0, %v4926_v3 }
0x2526   :  { %4927 = vrcp.f32 %v2998_v4 }
0x2530   :  { %v4928_v5 = vpop.eup %4927 }
0x2589   :  { %v3003_v6 = vpop.permute.xlu0 %3002 }
0x258a   :  { %v3005_v10 = vmul.f32 %v4928_v5, %v3003_v6 }
0x258c   :  { %3007 = vrot.lane.b32.xlu1 %v3005_v10, %s5035_s14 }
0x25fe   :  { %v3008_v9 = vpop.permute.xlu1 %3007 }
0x25ff   :  { %v3010_v11 = vadd.f32 %v3008_v9, %v2992_v60 }
0x2601   :  { %4929 = vtanh.f32 %v3010_v11 }
0x260b   :  { %v4930_v12 = vpop.eup %4929 }
0x260c   :  { %v3012_v14 = vsub.f32 %v5676_v13, %v4930_v12  ;;  %v3134_v13 = vld [vmem:[#allocation4 + $0x20] sm:$0x7] }
0x260d   :  { %4457 = vmatpush3.msk.msra.mxu0 %vm2469_vm7, %v3134_v13 }
0x260e   :  { %3014 = vrot.lane.b32.xlu0 %v3012_v14, %s5036_s9  ;;  %4744 = vmatprep.subr.bf16.mxu0 %v5033_v21 }
0x2680   :  { %v3015_v20 = vpop.permute.xlu0 %3014 }
0x2681   :  { %v3017_v15 = vmul.f32 %v4928_v5, %v3015_v20 }
0x2683   :  { %3019 = vrot.lane.b32.xlu1 %v3017_v15, %s5034_s28 }
0x2687   :  { %3126 = vrot.lane.b32.xlu1 %v5733_v55, %s5037_s4 }
0x26f5   :  { %v3020_v16 = vpop.permute.xlu1 %3019 }
0x26f6   :  { %v5753_v24 = vadd.f32 %v4930_v12, %v3020_v16  ;;  %v3467_v16 = vld [vmem:[#allocation4 + $0x20] sm:$0x7] }
0x26f8   :  { %3024 = vrot.lane.b32.xlu0 %v5753_v24, %s5035_s14 }
0x26f9   :  { %v3127_v29 = vpop.permute.xlu1 %3126 }
0x276a   :  { %v3025_v17 = vpop.permute.xlu0 %3024 }
0x276b   :  { %4446 = vmatmul.mubr.msk.f32.vlgmr.msra.gmra.mrb[20].mxu1 %vm755_vm4, %v3025_v17 }
0x276c   :  { %4734 = vmatpush3.bf16.msra.mxu1 %v5614_v32  ;;  %4477 = vmatprep.mubr.msk.f32.mxu1 %vm5032_vm0, %v5031_v0 }
0x276d   :  { %4735 = vmatprep.subr.bf16.mxu1 %v5033_v21 }
0x2770   :  { %4737 = vmatpush3.bf16.msra.mxu1 %v5617_v34 }
0x2771   :  { %4738 = vmatprep.subr.bf16.mxu1 %v5033_v21 }
0x2774   :  { %4740 = vmatpush3.bf16.msra.mxu1 %v5623_v39 }
0x2775   :  { %4741 = vmatprep.subr.bf16.mxu1 %v5033_v21 }
0x2778   :  { %4743 = vmatpush3.bf16.msra.mxu1 %v5626_v41 }
0x2779   :  { %4750 = vmatprep.subr.bf16.mxu1 %v5033_v21 }
0x283e   :  { %v3094_v18 = vpop.f32.mrb[20].mxu1 }
0x283f   :  { %v3095_v22 = vadd.f32 %v5696_v19, %v3094_v18  ;;  %v4447_v23 = vpop.f32.mrb[21].mxu1 }
0x2841   :  { %v5772_v27 = vadd.f32 %v3095_v22, %v5702_v28 }
0x2843   :  { %v3106_v30 = vrot.slane %v5772_v27, %v5699_v26  ;;  %v3129_v31 = vsel %vm2458_vm6, %v5772_v27, %v3127_v29 }
0x2844   :  { %4459 = vmatmul.mubr.msk.f32.vlgmr.msra.gmra.mrb[22].mxu0 %vm2465_vm8, %v3129_v31 }
0x2845   :  { %v3107_v33 = vcombine.high %v3106_v30, %v3106_v30  ;;  %v3114_v35 = vrot.slane %v3106_v30, %v5699_v26  ;;  %4746 = vmatpush3.bf16.msra.mxu0 %v5662_v7  ;;  %4488 = vmatprep.mubr.msk.f32.mxu0 %vm5032_vm0, %v5031_v0 }
0x2846   :  { %4747 = vmatprep.subr.bf16.mxu0 %v5033_v21 }
0x2847   :  { %v3121_v28 = vrot.slane %v3107_v33, %v5699_v26  ;;  %3124 = vst.msk [vmem:[%s5908_s13 + $0x1] sm:$0x1] %vm2790_vm9, %v3114_v35 }
0x2849   :  { %3125 = vst.msk [vmem:[%s5908_s13 + $0x5] sm:$0x1] %vm2790_vm9, %v3121_v28  ;;  %4749 = vmatpush3.bf16.msra.mxu0 %v5668_v8 }
0x284a   :  { %4756 = vmatprep.subr.bf16.mxu0 %v5033_v21 }
0x2917   :  { %v3207_v54 = vpop.f32.mrb[22].mxu0 }
0x2918   :  { %v3208_v36 = vadd.f32 %v5603_v62, %v3207_v54  ;;  %v4460_v37 = vpop.f32.mrb[23].mxu0 }
0x291a   :  { %3218 = vrot.lane.b32.xlu0 %v3208_v36, %s5034_s28  ;;  %v3864_v38 = vmul.f32 -1.442695, %v3208_v36 }
0x291c   :  { %4931 = vpow2.f32 %v3864_v38 }
0x2926   :  { %v4932_v49 = vpop.eup %4931 }
0x2927   :  { %v3214_v40 = vadd.f32 1.0, %v4932_v49 }
0x2929   :  { %4933 = vrcp.f32 %v3214_v40 }
0x2933   :  { %v4934_v57 = vpop.eup %4933 }
0x298c   :  { %v3219_v42 = vpop.permute.xlu0 %3218 }
0x298d   :  { %v3221_v2 = vmul.f32 %v4934_v57, %v3219_v42 }
0x298f   :  { %3223 = vrot.lane.b32.xlu1 %v3221_v2, %s5035_s14 }
0x2a01   :  { %v3224_v1 = vpop.permute.xlu1 %3223 }
0x2a02   :  { %v3226_v44 = vadd.f32 %v3224_v1, %v3208_v36 }
0x2a04   :  { %4935 = vtanh.f32 %v3226_v44 }
0x2a0e   :  { %v4936_v45 = vpop.eup %4935 }
0x2a0f   :  { %v3228_v48 = vsub.f32 %v5733_v55, %v4936_v45 }
0x2a11   :  { %3230 = vrot.lane.b32.xlu0 %v3228_v48, %s5036_s9 }
0x2a83   :  { %v3231_v50 = vpop.permute.xlu0 %3230 }
0x2a84   :  { %v3233_v25 = vmul.f32 %v4934_v57, %v3231_v50 }
0x2a86   :  { %3235 = vrot.lane.b32.xlu1 %v3233_v25, %s5034_s28 }
0x2a8a   :  { %3243 = vrot.lane.b32.xlu1 %v5753_v24, %s5036_s9 }
0x2af8   :  { %v3236_v51 = vpop.permute.xlu1 %3235 }
0x2af9   :  { %v5803_v52 = vadd.f32 %v4936_v45, %v3236_v51 }
0x2afb   :  { %3240 = vrot.lane.b32.xlu0 %v5803_v52, %s5035_s14 }
0x2afc   :  { %v3244_v56 = vpop.permute.xlu1 %3243 }
0x2b6d   :  { %v3241_v58 = vpop.permute.xlu0 %3240 }
0x2b6e   :  { %v3246_v59 = vsel %vm755_vm4, %v3241_v58, %v3244_v56 }
0x2b6f   :  { %4478 = vmatmul.mubr.msk.f32.vlgmr.msra.gmra.mrb[22].mxu1 %vm871_vm5, %v3246_v59 }
0x2b70   :  { %4752 = vmatpush3.bf16.msra.mxu1 %v5574_v47  ;;  %4501 = vmatprep.mubr.msk.f32.mxu1 %vm5032_vm0, %v5031_v0 }
0x2b71   :  { %4753 = vmatprep.subr.bf16.mxu1 %v5033_v21 }
0x2b74   :  { %4755 = vmatpush3.bf16.msra.mxu1 %v5579_v53 }
0x2b75   :  { %4499 = vmatprep.subr.mxu1 %v5031_v0 }
0x2b78   :  { %4500 = vmatpush3.msk.msra.mxu1 %vm2469_vm7, %v3467_v16 }
0x2b79   :  { %4768 = vmatprep.subr.bf16.mxu1 %v5033_v21 }
0x2c42   :  { %v3324_v55 = vpop.f32.mrb[22].mxu1 }
0x2c43   :  { %v3325_v43 = vadd.f32 %v5647_v46, %v3324_v55  ;;  %v4479_v60 = vpop.f32.mrb[23].mxu1 }
0x2c45   :  { %3335 = vrot.lane.b32.xlu0 %v3325_v43, %s5034_s28  ;;  %v3866_v61 = vmul.f32 -1.442695, %v3325_v43 }
0x2c47   :  { %4937 = vpow2.f32 %v3866_v61 }
0x2c51   :  { %v4938_v63 = vpop.eup %4937 }
0x2c52   :  { %v3331_v3 = vadd.f32 1.0, %v4938_v63 }
0x2c54   :  { %4939 = vrcp.f32 %v3331_v3 }
0x2c5e   :  { %v4940_v47 = vpop.eup %4939 }
0x2cb7   :  { %v3336_v4 = vpop.permute.xlu0 %3335 }
0x2cb8   :  { %v3338_v5 = vmul.f32 %v4940_v47, %v3336_v4 }
0x2cba   :  { %3340 = vrot.lane.b32.xlu1 %v3338_v5, %s5035_s14 }
0x2d2c   :  { %v3341_v6 = vpop.permute.xlu1 %3340 }
0x2d2d   :  { %v3343_v53 = vadd.f32 %v3341_v6, %v3325_v43 }
0x2d2f   :  { %4941 = vtanh.f32 %v3343_v53 }
0x2d39   :  { %v4942_v10 = vpop.eup %4941 }
0x2d3a   :  { %v3345_v9 = vsub.f32 %v5753_v24, %v4942_v10 }
0x2d3c   :  { %3347 = vrot.lane.b32.xlu0 %v3345_v9, %s5036_s9 }
0x2dae   :  { %v3348_v11 = vpop.permute.xlu0 %3347 }
0x2daf   :  { %v3350_v12 = vmul.f32 %v4940_v47, %v3348_v11 }
0x2db1   :  { %3352 = vrot.lane.b32.xlu1 %v3350_v12, %s5034_s28 }
0x2db5   :  { %3459 = vrot.lane.b32.xlu1 %v5803_v52, %s5037_s4 }
0x2e23   :  { %v3353_v14 = vpop.permute.xlu1 %3352 }
0x2e24   :  { %v5823_v20 = vadd.f32 %v4942_v10, %v3353_v14 }
0x2e26   :  { %3357 = vrot.lane.b32.xlu0 %v5823_v20, %s5035_s14 }
0x2e98   :  { %v3358_v15 = vpop.permute.xlu0 %3357 }
0x2e99   :  { %4489 = vmatmul.mubr.msk.f32.vlgmr.msra.gmra.mrb[24].mxu0 %vm755_vm4, %v3358_v15 }
0x2e9a   :  { %4758 = vmatpush3.bf16.msra.mxu0 %v5614_v32  ;;  %4520 = vmatprep.mubr.msk.f32.mxu0 %vm5032_vm0, %v5031_v0 }
0x2e9b   :  { %4759 = vmatprep.subr.bf16.mxu0 %v5033_v21 }
0x2e9e   :  { %4761 = vmatpush3.bf16.msra.mxu0 %v5617_v34  ;;  %v3460_v34 = vpop.permute.xlu1 %3459 }
0x2e9f   :  { %4762 = vmatprep.subr.bf16.mxu0 %v5033_v21 }
0x2ea2   :  { %4764 = vmatpush3.bf16.msra.mxu0 %v5623_v39 }
0x2ea3   :  { %4765 = vmatprep.subr.bf16.mxu0 %v5033_v21 }
0x2ea6   :  { %4767 = vmatpush3.bf16.msra.mxu0 %v5626_v41 }
0x2f6c   :  { %v3427_v32 = vpop.f32.mrb[24].mxu0 }
0x2f6d   :  { %v3428_v24 = vadd.f32 %v5696_v19, %v3427_v32  ;;  %v4490_v17 = vpop.f32.mrb[25].mxu0 }
0x2f6f   :  { %v5841_v13 = vadd.f32 %v3428_v24, %v5772_v27 }
0x2f71   :  { %v3439_v39 = vrot.slane %v5841_v13, %v5699_v26  ;;  %v3462_v18 = vsel %vm2458_vm6, %v5841_v13, %v3460_v34 }
0x2f72   :  { %4502 = vmatmul.mubr.msk.f32.vlgmr.msra.gmra.mrb[24].mxu1 %vm2465_vm8, %v3462_v18 }
0x2f73   :  { %v3440_v41 = vcombine.high %v3439_v39, %v3439_v39  ;;  %v3447_v22 = vrot.slane %v3439_v39, %v5699_v26  ;;  %4770 = vmatpush3.bf16.msra.mxu1 %v5662_v7  ;;  %4531 = vmatprep.mubr.msk.f32.mxu1 %vm5032_vm0, %v5031_v0 }
0x2f74   :  { %4771 = vmatprep.subr.bf16.mxu1 %v5033_v21 }
0x2f75   :  { %v3454_v23 = vrot.slane %v3440_v41, %v5699_v26  ;;  %3457 = vst.msk [vmem:[%s5908_s13 + $0x2] sm:$0x1] %vm2790_vm9, %v3447_v22 }
0x2f77   :  { %3458 = vst.msk [vmem:[%s5908_s13 + $0x6] sm:$0x1] %vm2790_vm9, %v3454_v23  ;;  %4773 = vmatpush3.bf16.msra.mxu1 %v5668_v8 }
0x3045   :  { %v3540_v7 = vpop.f32.mrb[24].mxu1 }
0x3046   :  { %v3541_v27 = vadd.f32 %v5603_v62, %v3540_v7  ;;  %v4503_v0 = vpop.f32.mrb[25].mxu1 }
0x3048   :  { %3551 = vrot.lane.b32.xlu0 %v3541_v27, %s5034_s28  ;;  %v3870_v21 = vmul.f32 -1.442695, %v3541_v27 }
0x304a   :  { %4943 = vpow2.f32 %v3870_v21 }
0x3054   :  { %v4944_v29 = vpop.eup %4943 }
0x3055   :  { %v3547_v30 = vadd.f32 1.0, %v4944_v29 }
0x3057   :  { %4945 = vrcp.f32 %v3547_v30 }
0x3061   :  { %v4946_v31 = vpop.eup %4945 }
0x30ba   :  { %v3552_v33 = vpop.permute.xlu0 %3551 }
0x30bb   :  { %v3554_v35 = vmul.f32 %v4946_v31, %v3552_v33 }
0x30bd   :  { %3556 = vrot.lane.b32.xlu1 %v3554_v35, %s5035_s14 }
0x312f   :  { %v3557_v28 = vpop.permute.xlu1 %3556 }
0x3130   :  { %v3559_v54 = vadd.f32 %v3557_v28, %v3541_v27 }
0x3132   :  { %4947 = vtanh.f32 %v3559_v54 }
0x313c   :  { %v4948_v8 = vpop.eup %4947 }
0x313d   :  { %v3561_v36 = vsub.f32 %v5803_v52, %v4948_v8 }
0x313f   :  { %3563 = vrot.lane.b32.xlu0 %v3561_v36, %s5036_s9 }
0x31b1   :  { %v3564_v62 = vpop.permute.xlu0 %3563 }
0x31b2   :  { %v3566_v37 = vmul.f32 %v4946_v31, %v3564_v62 }
0x31b4   :  { %3568 = vrot.lane.b32.xlu1 %v3566_v37, %s5034_s28 }
0x31b8   :  { %3576 = vrot.lane.b32.xlu1 %v5823_v20, %s5036_s9 }
0x3226   :  { %v3569_v38 = vpop.permute.xlu1 %3568 }
0x3227   :  { %v3571_v49 = vadd.f32 %v4948_v8, %v3569_v38 }
0x3229   :  { %3573 = vrot.lane.b32.xlu0 %v3571_v49, %s5035_s14 }
0x322a   :  { %v3577_v40 = vpop.permute.xlu1 %3576 }
0x329b   :  { %v3574_v57 = vpop.permute.xlu0 %3573 }
0x329c   :  { %v3579_v42 = vsel %vm755_vm4, %v3574_v57, %v3577_v40 }
0x329d   :  { %4521 = vmatmul.mubr.msk.f32.vlgmr.msra.gmra.mrb[26].mxu0 %vm871_vm5, %v3579_v42 }
0x3370   :  { %v3657_v2 = vpop.f32.mrb[26].mxu0 }
0x3371   :  { %v3658_v1 = vadd.f32 %v5647_v46, %v3657_v2  ;;  %v4522_v44 = vpop.f32.mrb[27].mxu0 }
0x3373   :  { %3668 = vrot.lane.b32.xlu0 %v3658_v1, %s5034_s28  ;;  %v3872_v45 = vmul.f32 -1.442695, %v3658_v1 }
0x3375   :  { %4949 = vpow2.f32 %v3872_v45 }
0x337f   :  { %v4950_v48 = vpop.eup %4949 }
0x3380   :  { %v3664_v50 = vadd.f32 1.0, %v4950_v48 }
0x3382   :  { %4951 = vrcp.f32 %v3664_v50 }
0x338c   :  { %v4952_v25 = vpop.eup %4951 }
0x33e5   :  { %v3669_v51 = vpop.permute.xlu0 %3668 }
0x33e6   :  { %v3671_v52 = vmul.f32 %v4952_v25, %v3669_v51 }
0x33e8   :  { %3673 = vrot.lane.b32.xlu1 %v3671_v52, %s5035_s14 }
0x345a   :  { %v3674_v56 = vpop.permute.xlu1 %3673 }
0x345b   :  { %v3676_v58 = vadd.f32 %v3674_v56, %v3658_v1 }
0x345d   :  { %4953 = vtanh.f32 %v3676_v58 }
0x3467   :  { %v4954_v59 = vpop.eup %4953 }
0x3468   :  { %v3678_v55 = vsub.f32 %v5823_v20, %v4954_v59 }
0x346a   :  { %3680 = vrot.lane.b32.xlu0 %v3678_v55, %s5036_s9 }
0x34dc   :  { %v3681_v46 = vpop.permute.xlu0 %3680 }
0x34dd   :  { %v3683_v43 = vmul.f32 %v4952_v25, %v3681_v46 }
0x34df   :  { %3685 = vrot.lane.b32.xlu1 %v3683_v43, %s5034_s28 }
0x3551   :  { %v3686_v60 = vpop.permute.xlu1 %3685 }
0x3552   :  { %v3688_v61 = vadd.f32 %v4954_v59, %v3686_v60 }
0x3554   :  { %3690 = vrot.lane.b32.xlu0 %v3688_v61, %s5035_s14 }
0x35c6   :  { %v3691_v63 = vpop.permute.xlu0 %3690 }
0x35c7   :  { %4532 = vmatmul.mubr.msk.f32.vlgmr.msra.gmra.mrb[26].mxu1 %vm755_vm4, %v3691_v63 }
0x369a   :  { %v3760_v3 = vpop.f32.mrb[26].mxu1 }
0x369b   :  { %v3761_v47 = vadd.f32 %v5696_v19, %v3760_v3  ;;  %v4533_v4 = vpop.f32.mrb[27].mxu1 }
0x369d   :  { %v3764_v5 = vadd.f32 %v3761_v47, %v5841_v13 }
0x369f   :  { %v3772_v6 = vrot.slane %v3764_v5, %v5699_v26 }
0x36a1   :  { %v3773_v53 = vcombine.high %v3772_v6, %v3772_v6  ;;  %v3780_v10 = vrot.slane %v3772_v6, %v5699_v26 }
0x36a3   :  { %v3787_v9 = vrot.slane %v3773_v53, %v5699_v26  ;;  %3790 = vst.msk [vmem:[%s5908_s13 + $0x3] sm:$0x1] %vm2790_vm9, %v3780_v10 }
0x36a5   :  { %3791 = vst.msk [vmem:[%s5908_s13 + $0x7] sm:$0x1] %vm2790_vm9, %v3787_v9 }
0x36a6   :  { %3796 = vsyncpa [#allocation3], 1 }
0x36a7   :  { %3797 = vsyncpa [#allocation5], 1 }

</bundles_post_ra>
